<compile_context>
chip_gen: v7x
topology: tpu7x:2x2x1
jax: 0.10.0
libtpu: 0.0.40
codegen_flags: <defaults>
</compile_context>

<pallas_src>
import math

import jax
import jax.numpy as jnp
from jax import lax
from jax.experimental import pallas as pl
from jax.experimental.pallas import tpu as pltpu


# ------------------------- configuration (small shapes) -------------------------
D_MODEL = 32          # d_model
NHEAD = 4             # nhead
HEAD_DIM = D_MODEL // NHEAD
DIM_FF = 64           # dim_feedforward
L_TGT = 8             # target sequence length
L_MEM = 16            # memory sequence length
BATCH = 2
LN_EPS = 1e-5

# ---- weight slab layout: (320, 64) f32, every row offset is a multiple of 8 ----
RW_QK_S = 0      # (32, 64)  self-attn Q|K packed, 1/sqrt(hd) folded into Q half
RW_FF1 = 32      # (32, 64)  linear1
RW_FF2 = 64      # (64, 32)  linear2 (cols 0:32)
RW_V_S = 128     # (32, 32)  self-attn V
RW_O_S = 160     # (32, 32)  self-attn out proj
RW_Q_C = 192     # (32, 32)  cross-attn Q (scaled)
RW_K_C = 224     # (32, 32)  cross-attn K
RW_V_C = 256     # (32, 32)  cross-attn V
RW_O_C = 288     # (32, 32)  cross-attn out proj
W_SLAB_ROWS, W_SLAB_COLS = 320, 64

# ---- vector slab layout: (16, 64) f32, one bias/gamma/beta per row ----
(RV_B_QK_S, RV_B_V_S, RV_B_O_S,
 RV_B_Q_C, RV_B_K_C, RV_B_V_C, RV_B_O_C,
 RV_B_FF1, RV_B_FF2,
 RV_G1, RV_BE1, RV_G2, RV_BE2, RV_G3, RV_BE3) = range(15)
V_SLAB_ROWS = 16


# ----------------------------------- kernel --------------------------------------
def decoder_layer_kernel(tgt_ref, qpos_ref, mem_ref, pos_ref, w_ref, v_ref, out_ref):
    E, H, hd, N, F = D_MODEL, NHEAD, HEAD_DIM, BATCH, DIM_FF

    # ---- packed-parameter access: static, tile-aligned slices of the slabs ----
    def wmat(row0, rows, cols):
        return w_ref[row0:row0 + rows, 0:cols]

    vecs = v_ref[...]                              # (16, 64), loaded once

    def vrow(idx, cols=E):
        return vecs[idx:idx + 1, 0:cols]           # (1, cols)

    def layernorm(x, g, b):
        mu = jnp.mean(x, axis=-1, keepdims=True)
        xc = x - mu
        var = jnp.mean(xc * xc, axis=-1, keepdims=True)
        return xc * lax.rsqrt(var + LN_EPS) * g + b

    def softmax_rows(s):
        # stable softmax over last axis; reciprocal estimate on the EUP (idle
        # slot) + one Newton step keeps f32 accuracy for the tolerance check.
        s = s - jnp.max(s, axis=-1, keepdims=True)
        p = jnp.exp(s)
        denom = jnp.sum(p, axis=-1, keepdims=True)
        inv = pl.reciprocal(denom, approx=True)
        inv = inv * (2.0 - denom * inv)
        return p * inv

    def split_heads(z):                            # (R, E) -> (H, R, hd)
        return jnp.stack([z[:, h * hd:(h + 1) * hd] for h in range(H)], axis=0)

    def merge_heads(o):                            # (H, R, hd) -> (R, E)
        return jnp.concatenate([o[h] for h in range(H)], axis=1)

    def batch_mask(nq, nk):
        # rows are flattened (seq, batch): row % N is the batch index.  Additive
        # -1e30 mask keeps different batch elements from attending to each
        # other without any (L,N,H,hd) relayout of the activations.
        qi = lax.broadcasted_iota(jnp.int32, (nq, nk), 0)
        kj = lax.broadcasted_iota(jnp.int32, (nq, nk), 1)
        return jnp.where((qi % N) == (kj % N), 0.0, -1e30).astype(jnp.float32)

    def attention(q2d, k2d, v2d, w_o, b_o):
        # q2d:(Rq,E) k2d,v2d:(Rk,E); scale already folded into the Q weights.
        qh, kh, vh = split_heads(q2d), split_heads(k2d), split_heads(v2d)
        s = jnp.einsum("hqd,hkd->hqk", qh, kh, preferred_element_type=jnp.float32)
        s = s + batch_mask(q2d.shape[0], k2d.shape[0])[None]
        p = softmax_rows(s)
        o = jnp.einsum("hqk,hkd->hqd", p, vh, preferred_element_type=jnp.float32)
        # head merge -> one lane-dense (E,E) output-projection matmul
        return jnp.dot(merge_heads(o), w_o, preferred_element_type=jnp.float32) + b_o

    tgt = tgt_ref[...]        # (L*N, E), rows ordered (l, n)
    qp = qpos_ref[...]        # (L*N, E)
    mem = mem_ref[...]        # (S*N, E)
    pp = pos_ref[...]         # (S*N, E)

    # -------- self attention: q = k = tgt + query_pos, v = tgt --------
    x_qk = tgt + qp
    qk = jnp.dot(x_qk, wmat(RW_QK_S, E, 2 * E),
                 preferred_element_type=jnp.float32) + vrow(RV_B_QK_S, 2 * E)
    v_s = jnp.dot(tgt, wmat(RW_V_S, E, E),
                  preferred_element_type=jnp.float32) + vrow(RV_B_V_S)
    attn = attention(qk[:, 0:E], qk[:, E:2 * E], v_s,
                     wmat(RW_O_S, E, E), vrow(RV_B_O_S))
    t1 = layernorm(tgt + attn, vrow(RV_G1), vrow(RV_BE1))

    # -------- cross attention: q = t1 + query_pos, k = mem + pos, v = mem --------
    q_c = jnp.dot(t1 + qp, wmat(RW_Q_C, E, E),
                  preferred_element_type=jnp.float32) + vrow(RV_B_Q_C)
    k_c = jnp.dot(mem + pp, wmat(RW_K_C, E, E),
                  preferred_element_type=jnp.float32) + vrow(RV_B_K_C)
    v_c = jnp.dot(mem, wmat(RW_V_C, E, E),
                  preferred_element_type=jnp.float32) + vrow(RV_B_V_C)
    attn = attention(q_c, k_c, v_c, wmat(RW_O_C, E, E), vrow(RV_B_O_C))
    t2 = layernorm(t1 + attn, vrow(RV_G2), vrow(RV_BE2))

    # -------- feed-forward (ReLU) --------
    h = jnp.maximum(
        jnp.dot(t2, wmat(RW_FF1, E, F), preferred_element_type=jnp.float32)
        + vrow(RV_B_FF1, F), 0.0)
    y = jnp.dot(h, wmat(RW_FF2, F, E), preferred_element_type=jnp.float32) \
        + vrow(RV_B_FF2)
    out_ref[...] = layernorm(t2 + y, vrow(RV_G3), vrow(RV_BE3)).astype(out_ref.dtype)


# ---------------------------------- wrapper ---------------------------------------
def transformer_decoder_layer(tgt_lne, mem_sne, query_pos_lne, pos_sne, wslab, vslab):
    """Seq-first activations; contiguous (free) reshape to rows; single no-grid call."""
    L, N, E = tgt_lne.shape
    vmem = pl.BlockSpec(memory_space=pltpu.MemorySpace.VMEM)
    flat = lambda x: x.reshape(-1, E)              # (T,N,E)->(T*N,E), contiguous

    out_flat = pl.pallas_call(
        decoder_layer_kernel,
        out_shape=jax.ShapeDtypeStruct((L * N, E), tgt_lne.dtype),
        in_specs=[vmem] * 6,
        out_specs=vmem,
    )(flat(tgt_lne), flat(query_pos_lne), flat(mem_sne), flat(pos_sne), wslab, vslab)
    return out_flat.reshape(L, N, E)


# ------------------------------ parameter creation --------------------------------
def make_params(key):
    keys = jax.random.split(key, 32)
    ki = iter(keys)

    def w(shape, scale=0.1):
        return (scale * jax.random.normal(next(ki), shape)).astype(jnp.float32)

    E, F = D_MODEL, DIM_FF
    params = {}
    # attention weights stored pre-transposed as (in, out); biases as (1, out)
    for tag in ("s", "c"):
        params[f"wq_{tag}"] = w((E, E))
        params[f"wk_{tag}"] = w((E, E))
        params[f"wv_{tag}"] = w((E, E))
        params[f"bq_{tag}"] = w((1, E), 0.02)
        params[f"bk_{tag}"] = w((1, E), 0.02)
        params[f"bv_{tag}"] = w((1, E), 0.02)
        params[f"wo_{tag}"] = w((E, E))
        params[f"bo_{tag}"] = w((1, E), 0.02)
    # FFN
    params["w1"] = w((E, F))
    params["b1"] = w((1, F), 0.02)
    params["w2"] = w((F, E))
    params["b2"] = w((1, E), 0.02)
    # LayerNorms
    for i in (1, 2, 3):
        params[f"g{i}"] = (1.0 + 0.01 * jax.random.normal(next(ki), (1, E))).astype(jnp.float32)
        params[f"be{i}"] = w((1, E), 0.01)
    return params


def pack_params(p):
    """One-time host-side packing into two lane-dense slabs (weight + vectors)."""
    E = D_MODEL
    scale = 1.0 / math.sqrt(HEAD_DIM)

    def pad64(x):
        r, c = x.shape
        return x if c == W_SLAB_COLS else jnp.pad(x, ((0, 0), (0, W_SLAB_COLS - c)))

    wslab = jnp.concatenate([
        jnp.concatenate([p["wq_s"] * scale, p["wk_s"]], axis=1),   # RW_QK_S  0:32
        p["w1"],                                                   # RW_FF1  32:64
        pad64(p["w2"]),                                            # RW_FF2  64:128
        pad64(p["wv_s"]),                                          # RW_V_S 128:160
        pad64(p["wo_s"]),                                          # RW_O_S 160:192
        pad64(p["wq_c"] * scale),                                  # RW_Q_C 192:224
        pad64(p["wk_c"]),                                          # RW_K_C 224:256
        pad64(p["wv_c"]),                                          # RW_V_C 256:288
        pad64(p["wo_c"]),                                          # RW_O_C 288:320
    ], axis=0).astype(jnp.float32)
    assert wslab.shape == (W_SLAB_ROWS, W_SLAB_COLS)

    def vec(x):
        return pad64(x.reshape(1, -1))

    vslab = jnp.concatenate([
        vec(jnp.concatenate([p["bq_s"] * scale, p["bk_s"]], axis=1)),  # RV_B_QK_S
        vec(p["bv_s"]), vec(p["bo_s"]),
        vec(p["bq_c"] * scale), vec(p["bk_c"]), vec(p["bv_c"]), vec(p["bo_c"]),
        vec(p["b1"]), vec(p["b2"]),
        vec(p["g1"]), vec(p["be1"]),
        vec(p["g2"]), vec(p["be2"]),
        vec(p["g3"]), vec(p["be3"]),
        jnp.zeros((1, W_SLAB_COLS), jnp.float32),                      # pad to 16 rows
    ], axis=0).astype(jnp.float32)
    assert vslab.shape == (V_SLAB_ROWS, W_SLAB_COLS)
    return wslab, vslab


# -------------------------- pure-JAX reference (validation) ------------------------
def reference(tgt_lne, mem_sne, qpos_lne, pos_sne, p):
    def ln(x, g, b):
        mu = jnp.mean(x, axis=-1, keepdims=True)
        var = jnp.mean((x - mu) ** 2, axis=-1, keepdims=True)
        return (x - mu) / jnp.sqrt(var + LN_EPS) * g + b

    def mha(qi, ki, vi, wq, bq, wk, bk, wv, bv, wo, bo):
        q = qi @ wq + bq
        k = ki @ wk + bk
        v = vi @ wv + bv
        Lq, N, E = q.shape
        Lk = k.shape[0]
        scale = 1.0 / math.sqrt(HEAD_DIM)

        def split(x, Lx):
            return x.reshape(Lx, N, NHEAD, HEAD_DIM).transpose(1, 2, 0, 3)

        qh, kh, vh = split(q, Lq) * scale, split(k, Lk), split(v, Lk)
        s = jnp.einsum("nhqd,nhkd->nhqk", qh, kh)
        pmx = jax.nn.softmax(s, axis=-1)
        o = jnp.einsum("nhqk,nhkd->nhqd", pmx, vh)
        o = o.transpose(2, 0, 1, 3).reshape(Lq, N, E)
        return o @ wo + bo

    tgt = tgt_lne
    qk = tgt + qpos_lne
    t2 = mha(qk, qk, tgt, p["wq_s"], p["bq_s"], p["wk_s"], p["bk_s"],
             p["wv_s"], p["bv_s"], p["wo_s"], p["bo_s"])
    tgt = ln(tgt + t2, p["g1"], p["be1"])
    t2 = mha(tgt + qpos_lne, mem_sne + pos_sne, mem_sne,
             p["wq_c"], p["bq_c"], p["wk_c"], p["bk_c"],
             p["wv_c"], p["bv_c"], p["wo_c"], p["bo_c"])
    tgt = ln(tgt + t2, p["g2"], p["be2"])
    h = jnp.maximum(tgt @ p["w1"] + p["b1"], 0.0)
    t2 = h @ p["w2"] + p["b2"]
    return ln(tgt + t2, p["g3"], p["be3"])


# ------------------------------------- main ----------------------------------------
if __name__ == "__main__":
    key = jax.random.PRNGKey(0)
    k_in, k_mem, k_qp, k_pp, k_par = jax.random.split(key, 5)

    tgt = jax.random.normal(k_in, (L_TGT, BATCH, D_MODEL), dtype=jnp.float32)
    memory = jax.random.normal(k_mem, (L_MEM, BATCH, D_MODEL), dtype=jnp.float32)
    query_pos = jax.random.normal(k_qp, (L_TGT, BATCH, D_MODEL), dtype=jnp.float32)
    pos = jax.random.normal(k_pp, (L_MEM, BATCH, D_MODEL), dtype=jnp.float32)

    params = make_params(k_par)
    wslab, vslab = pack_params(params)        # one-time packing outside the kernel

    out = transformer_decoder_layer(tgt, memory, query_pos, pos, wslab, vslab)
    out = jax.block_until_ready(out)

    ref = reference(tgt, memory, query_pos, pos, params)
    assert out.shape == (L_TGT, BATCH, D_MODEL)
    err = jnp.max(jnp.abs(out - ref))
    assert jnp.allclose(out, ref, atol=2e-4, rtol=2e-4), f"max abs err {err}"

    print("KERNEL_OK")
</pallas_src>

<mosaic_0001>
module attributes {stable_mosaic.version = 11 : i64} {
  func.func @decoder_layer_kernel(%arg0: memref<16x32xf32, #tpu.memory_space<vmem>>, %arg1: memref<16x32xf32, #tpu.memory_space<vmem>>, %arg2: memref<32x32xf32, #tpu.memory_space<vmem>>, %arg3: memref<32x32xf32, #tpu.memory_space<vmem>>, %arg4: memref<320x64xf32, #tpu.memory_space<vmem>>, %arg5: memref<16x64xf32, #tpu.memory_space<vmem>>, %arg6: memref<16x32xf32, #tpu.memory_space<vmem>>) attributes {dimension_semantics = [], scalar_prefetch = 0 : i64, scratch_operands = 0 : i64, tpu.core_type = #tpu.core_type<tc>} {
    %c0 = arith.constant 0 : index
    %c0_0 = arith.constant 0 : index
    %0 = vector.load %arg5[%c0, %c0_0] : memref<16x64xf32, #tpu.memory_space<vmem>>, vector<16x64xf32>
    %c0_1 = arith.constant 0 : index
    %c0_2 = arith.constant 0 : index
    %1 = vector.load %arg0[%c0_1, %c0_2] : memref<16x32xf32, #tpu.memory_space<vmem>>, vector<16x32xf32>
    %c0_3 = arith.constant 0 : index
    %c0_4 = arith.constant 0 : index
    %2 = vector.load %arg1[%c0_3, %c0_4] : memref<16x32xf32, #tpu.memory_space<vmem>>, vector<16x32xf32>
    %c0_5 = arith.constant 0 : index
    %c0_6 = arith.constant 0 : index
    %3 = vector.load %arg2[%c0_5, %c0_6] : memref<32x32xf32, #tpu.memory_space<vmem>>, vector<32x32xf32>
    %c0_7 = arith.constant 0 : index
    %c0_8 = arith.constant 0 : index
    %4 = vector.load %arg3[%c0_7, %c0_8] : memref<32x32xf32, #tpu.memory_space<vmem>>, vector<32x32xf32>
    %5 = arith.addf %1, %2 : vector<16x32xf32>
    %c0_9 = arith.constant 0 : index
    %c0_10 = arith.constant 0 : index
    %6 = vector.load %arg4[%c0_9, %c0_10] : memref<320x64xf32, #tpu.memory_space<vmem>>, vector<32x64xf32>
    %cst = arith.constant dense<0.000000e+00> : vector<16x64xf32>
    %7 = tpu.matmul %5, %6, %cst {dimension_numbers = #tpu.dot_dimension_numbers<[1], [0], [0], [1], [0, 0, 1, 1], [], []>} : vector<16x32xf32>, vector<32x64xf32>, vector<16x64xf32> -> vector<16x64xf32>
    %8 = vector.extract_strided_slice %0 {offsets = [0, 0], sizes = [1, 64], strides = [1, 1]} : vector<16x64xf32> to vector<1x64xf32>
    %9 = vector.broadcast %8 : vector<1x64xf32> to vector<16x64xf32>
    %10 = arith.addf %7, %9 : vector<16x64xf32>
    %c128 = arith.constant 128 : index
    %c0_11 = arith.constant 0 : index
    %11 = vector.load %arg4[%c128, %c0_11] : memref<320x64xf32, #tpu.memory_space<vmem>>, vector<32x32xf32>
    %cst_12 = arith.constant dense<0.000000e+00> : vector<16x32xf32>
    %12 = tpu.matmul %1, %11, %cst_12 {dimension_numbers = #tpu.dot_dimension_numbers<[1], [0], [0], [1], [0, 0, 1, 1], [], []>} : vector<16x32xf32>, vector<32x32xf32>, vector<16x32xf32> -> vector<16x32xf32>
    %13 = vector.extract_strided_slice %0 {offsets = [1, 0], sizes = [1, 32], strides = [1, 1]} : vector<16x64xf32> to vector<1x32xf32>
    %14 = vector.broadcast %13 : vector<1x32xf32> to vector<16x32xf32>
    %15 = arith.addf %12, %14 : vector<16x32xf32>
    %16 = vector.extract_strided_slice %10 {offsets = [0, 0], sizes = [16, 32], strides = [1, 1]} : vector<16x64xf32> to vector<16x32xf32>
    %17 = vector.extract_strided_slice %10 {offsets = [0, 32], sizes = [16, 32], strides = [1, 1]} : vector<16x64xf32> to vector<16x32xf32>
    %c160 = arith.constant 160 : index
    %c0_13 = arith.constant 0 : index
    %18 = vector.load %arg4[%c160, %c0_13] : memref<320x64xf32, #tpu.memory_space<vmem>>, vector<32x32xf32>
    %19 = vector.extract_strided_slice %0 {offsets = [2, 0], sizes = [1, 32], strides = [1, 1]} : vector<16x64xf32> to vector<1x32xf32>
    %20 = vector.extract_strided_slice %16 {offsets = [0, 0], sizes = [16, 8], strides = [1, 1]} : vector<16x32xf32> to vector<16x8xf32>
    %21 = vector.extract_strided_slice %16 {offsets = [0, 8], sizes = [16, 8], strides = [1, 1]} : vector<16x32xf32> to vector<16x8xf32>
    %22 = vector.extract_strided_slice %16 {offsets = [0, 16], sizes = [16, 8], strides = [1, 1]} : vector<16x32xf32> to vector<16x8xf32>
    %23 = vector.extract_strided_slice %16 {offsets = [0, 24], sizes = [16, 8], strides = [1, 1]} : vector<16x32xf32> to vector<16x8xf32>
    %24 = vector.shape_cast %20 : vector<16x8xf32> to vector<1x16x8xf32>
    %25 = vector.shape_cast %21 : vector<16x8xf32> to vector<1x16x8xf32>
    %26 = vector.shape_cast %22 : vector<16x8xf32> to vector<1x16x8xf32>
    %27 = vector.shape_cast %23 : vector<16x8xf32> to vector<1x16x8xf32>
    %28 = tpu.concatenate %24, %25, %26, %27 in 0 : vector<1x16x8xf32>, vector<1x16x8xf32>, vector<1x16x8xf32>, vector<1x16x8xf32> -> vector<4x16x8xf32>
    %29 = vector.extract_strided_slice %17 {offsets = [0, 0], sizes = [16, 8], strides = [1, 1]} : vector<16x32xf32> to vector<16x8xf32>
    %30 = vector.extract_strided_slice %17 {offsets = [0, 8], sizes = [16, 8], strides = [1, 1]} : vector<16x32xf32> to vector<16x8xf32>
    %31 = vector.extract_strided_slice %17 {offsets = [0, 16], sizes = [16, 8], strides = [1, 1]} : vector<16x32xf32> to vector<16x8xf32>
    %32 = vector.extract_strided_slice %17 {offsets = [0, 24], sizes = [16, 8], strides = [1, 1]} : vector<16x32xf32> to vector<16x8xf32>
    %33 = vector.shape_cast %29 : vector<16x8xf32> to vector<1x16x8xf32>
    %34 = vector.shape_cast %30 : vector<16x8xf32> to vector<1x16x8xf32>
    %35 = vector.shape_cast %31 : vector<16x8xf32> to vector<1x16x8xf32>
    %36 = vector.shape_cast %32 : vector<16x8xf32> to vector<1x16x8xf32>
    %37 = tpu.concatenate %33, %34, %35, %36 in 0 : vector<1x16x8xf32>, vector<1x16x8xf32>, vector<1x16x8xf32>, vector<1x16x8xf32> -> vector<4x16x8xf32>
    %38 = vector.extract_strided_slice %15 {offsets = [0, 0], sizes = [16, 8], strides = [1, 1]} : vector<16x32xf32> to vector<16x8xf32>
    %39 = vector.extract_strided_slice %15 {offsets = [0, 8], sizes = [16, 8], strides = [1, 1]} : vector<16x32xf32> to vector<16x8xf32>
    %40 = vector.extract_strided_slice %15 {offsets = [0, 16], sizes = [16, 8], strides = [1, 1]} : vector<16x32xf32> to vector<16x8xf32>
    %41 = vector.extract_strided_slice %15 {offsets = [0, 24], sizes = [16, 8], strides = [1, 1]} : vector<16x32xf32> to vector<16x8xf32>
    %42 = vector.shape_cast %38 : vector<16x8xf32> to vector<1x16x8xf32>
    %43 = vector.shape_cast %39 : vector<16x8xf32> to vector<1x16x8xf32>
    %44 = vector.shape_cast %40 : vector<16x8xf32> to vector<1x16x8xf32>
    %45 = vector.shape_cast %41 : vector<16x8xf32> to vector<1x16x8xf32>
    %46 = tpu.concatenate %42, %43, %44, %45 in 0 : vector<1x16x8xf32>, vector<1x16x8xf32>, vector<1x16x8xf32>, vector<1x16x8xf32> -> vector<4x16x8xf32>
    "tpu.trace_start"() <{level = 10 : i32, message = "hqd,hkd->hqk"}> : () -> ()
    %cst_14 = arith.constant dense<0.000000e+00> : vector<4x16x16xf32>
    %47 = tpu.matmul %28, %37, %cst_14 {dimension_numbers = #tpu.dot_dimension_numbers<[2], [2], [1], [1], [0, 0, 0, 1, 1, 1], [0], [0]>} : vector<4x16x8xf32>, vector<4x16x8xf32>, vector<4x16x16xf32> -> vector<4x16x16xf32>
    "tpu.trace_stop"() : () -> ()
    %48 = tpu.iota {dimensions = array<i32: 0>} : vector<16x16xi32>
    %49 = tpu.iota {dimensions = array<i32: 1>} : vector<16x16xi32>
    %c2_i32 = arith.constant 2 : i32
    %c0_i32 = arith.constant 0 : i32
    %50 = arith.cmpi eq, %c2_i32, %c0_i32 : i32
    %c1_i32 = arith.constant 1 : i32
    %51 = arith.select %50, %c1_i32, %c2_i32 : i32
    %52 = vector.broadcast %51 : i32 to vector<16x16xi32>
    %53 = arith.remsi %48, %52 : vector<16x16xi32>
    %c0_i32_15 = arith.constant 0 : i32
    %54 = vector.broadcast %c0_i32_15 : i32 to vector<16x16xi32>
    %55 = arith.cmpi ne, %53, %54 : vector<16x16xi32>
    %c0_i32_16 = arith.constant 0 : i32
    %56 = vector.broadcast %c0_i32_16 : i32 to vector<16x16xi32>
    %57 = arith.cmpi slt, %53, %56 : vector<16x16xi32>
    %c0_i32_17 = arith.constant 0 : i32
    %58 = arith.cmpi slt, %51, %c0_i32_17 : i32
    %59 = vector.broadcast %58 : i1 to vector<16x16xi1>
    %60 = vector.broadcast %59 : vector<16x16xi1> to vector<16x16xi1>
    %61 = arith.xori %57, %60 : vector<16x16xi1>
    %62 = arith.andi %61, %55 : vector<16x16xi1>
    %63 = vector.broadcast %51 : i32 to vector<16x16xi32>
    %64 = arith.addi %53, %63 : vector<16x16xi32>
    %65 = arith.select %62, %64, %53 : vector<16x16xi1>, vector<16x16xi32>
    %c2_i32_18 = arith.constant 2 : i32
    %c0_i32_19 = arith.constant 0 : i32
    %66 = arith.cmpi eq, %c2_i32_18, %c0_i32_19 : i32
    %c1_i32_20 = arith.constant 1 : i32
    %67 = arith.select %66, %c1_i32_20, %c2_i32_18 : i32
    %68 = vector.broadcast %67 : i32 to vector<16x16xi32>
    %69 = arith.remsi %49, %68 : vector<16x16xi32>
    %c0_i32_21 = arith.constant 0 : i32
    %70 = vector.broadcast %c0_i32_21 : i32 to vector<16x16xi32>
    %71 = arith.cmpi ne, %69, %70 : vector<16x16xi32>
    %c0_i32_22 = arith.constant 0 : i32
    %72 = vector.broadcast %c0_i32_22 : i32 to vector<16x16xi32>
    %73 = arith.cmpi slt, %69, %72 : vector<16x16xi32>
    %c0_i32_23 = arith.constant 0 : i32
    %74 = arith.cmpi slt, %67, %c0_i32_23 : i32
    %75 = vector.broadcast %74 : i1 to vector<16x16xi1>
    %76 = vector.broadcast %75 : vector<16x16xi1> to vector<16x16xi1>
    %77 = arith.xori %73, %76 : vector<16x16xi1>
    %78 = arith.andi %77, %71 : vector<16x16xi1>
    %79 = vector.broadcast %67 : i32 to vector<16x16xi32>
    %80 = arith.addi %69, %79 : vector<16x16xi32>
    %81 = arith.select %78, %80, %69 : vector<16x16xi1>, vector<16x16xi32>
    %82 = arith.cmpi eq, %65, %81 : vector<16x16xi32>
    %cst_24 = arith.constant 0.000000e+00 : f32
    %cst_25 = arith.constant -1.000000e+30 : f32
    %83 = vector.broadcast %cst_24 : f32 to vector<16x16xf32>
    %84 = vector.broadcast %cst_25 : f32 to vector<16x16xf32>
    %85 = arith.select %82, %83, %84 : vector<16x16xi1>, vector<16x16xf32>
    %86 = vector.shape_cast %85 : vector<16x16xf32> to vector<1x16x16xf32>
    %87 = vector.broadcast %86 : vector<1x16x16xf32> to vector<4x16x16xf32>
    %88 = arith.addf %47, %87 : vector<4x16x16xf32>
    %cst_26 = arith.constant dense<0xFF800000> : vector<4x16xf32>
    %89 = vector.multi_reduction <maximumf>, %88, %cst_26 [2] : vector<4x16x16xf32> to vector<4x16xf32>
    %90 = vector.shape_cast %89 : vector<4x16xf32> to vector<4x16x1xf32>
    %91 = vector.broadcast %90 : vector<4x16x1xf32> to vector<4x16x16xf32>
    %92 = arith.subf %88, %91 : vector<4x16x16xf32>
    %93 = math.exp %92 : vector<4x16x16xf32>
    %cst_27 = arith.constant dense<0.000000e+00> : vector<4x16xf32>
    %94 = vector.multi_reduction <add>, %93, %cst_27 [2] : vector<4x16x16xf32> to vector<4x16xf32>
    %95 = vector.shape_cast %94 : vector<4x16xf32> to vector<4x16x1xf32>
    %96 = tpu.reciprocal %95 {approx = true} : vector<4x16x1xf32> -> vector<4x16x1xf32>
    %97 = arith.mulf %95, %96 : vector<4x16x1xf32>
    %cst_28 = arith.constant 2.000000e+00 : f32
    %98 = vector.broadcast %cst_28 : f32 to vector<4x16x1xf32>
    %99 = arith.subf %98, %97 : vector<4x16x1xf32>
    %100 = arith.mulf %96, %99 : vector<4x16x1xf32>
    %101 = vector.broadcast %100 : vector<4x16x1xf32> to vector<4x16x16xf32>
    %102 = arith.mulf %93, %101 : vector<4x16x16xf32>
    "tpu.trace_start"() <{level = 10 : i32, message = "hqk,hkd->hqd"}> : () -> ()
    %cst_29 = arith.constant dense<0.000000e+00> : vector<4x16x8xf32>
    %103 = tpu.matmul %102, %46, %cst_29 {dimension_numbers = #tpu.dot_dimension_numbers<[2], [1], [1], [2], [0, 0, 0, 1, 1, 2], [0], [0]>} : vector<4x16x16xf32>, vector<4x16x8xf32>, vector<4x16x8xf32> -> vector<4x16x8xf32>
    "tpu.trace_stop"() : () -> ()
    %104 = vector.extract_strided_slice %103 {offsets = [0, 0, 0], sizes = [1, 16, 8], strides = [1, 1, 1]} : vector<4x16x8xf32> to vector<1x16x8xf32>
    %105 = vector.shape_cast %104 : vector<1x16x8xf32> to vector<16x8xf32>
    %106 = vector.extract_strided_slice %103 {offsets = [1, 0, 0], sizes = [1, 16, 8], strides = [1, 1, 1]} : vector<4x16x8xf32> to vector<1x16x8xf32>
    %107 = vector.shape_cast %106 : vector<1x16x8xf32> to vector<16x8xf32>
    %108 = vector.extract_strided_slice %103 {offsets = [2, 0, 0], sizes = [1, 16, 8], strides = [1, 1, 1]} : vector<4x16x8xf32> to vector<1x16x8xf32>
    %109 = vector.shape_cast %108 : vector<1x16x8xf32> to vector<16x8xf32>
    %110 = vector.extract_strided_slice %103 {offsets = [3, 0, 0], sizes = [1, 16, 8], strides = [1, 1, 1]} : vector<4x16x8xf32> to vector<1x16x8xf32>
    %111 = vector.shape_cast %110 : vector<1x16x8xf32> to vector<16x8xf32>
    %112 = tpu.concatenate %105, %107, %109, %111 in 1 : vector<16x8xf32>, vector<16x8xf32>, vector<16x8xf32>, vector<16x8xf32> -> vector<16x32xf32>
    %cst_30 = arith.constant dense<0.000000e+00> : vector<16x32xf32>
    %113 = tpu.matmul %112, %18, %cst_30 {dimension_numbers = #tpu.dot_dimension_numbers<[1], [0], [0], [1], [0, 0, 1, 1], [], []>} : vector<16x32xf32>, vector<32x32xf32>, vector<16x32xf32> -> vector<16x32xf32>
    %114 = vector.broadcast %19 : vector<1x32xf32> to vector<16x32xf32>
    %115 = arith.addf %113, %114 : vector<16x32xf32>
    %116 = arith.addf %1, %115 : vector<16x32xf32>
    %117 = vector.extract_strided_slice %0 {offsets = [9, 0], sizes = [1, 32], strides = [1, 1]} : vector<16x64xf32> to vector<1x32xf32>
    %118 = vector.extract_strided_slice %0 {offsets = [10, 0], sizes = [1, 32], strides = [1, 1]} : vector<16x64xf32> to vector<1x32xf32>
    %cst_31 = arith.constant dense<0.000000e+00> : vector<16xf32>
    %119 = vector.multi_reduction <add>, %116, %cst_31 [1] : vector<16x32xf32> to vector<16xf32>
    %120 = vector.shape_cast %119 : vector<16xf32> to vector<16x1xf32>
    %cst_32 = arith.constant 3.200000e+01 : f32
    %121 = vector.broadcast %cst_32 : f32 to vector<16x1xf32>
    %122 = arith.divf %120, %121 : vector<16x1xf32>
    %123 = vector.broadcast %122 : vector<16x1xf32> to vector<16x32xf32>
    %124 = arith.subf %116, %123 : vector<16x32xf32>
    %125 = arith.mulf %124, %124 : vector<16x32xf32>
    %cst_33 = arith.constant dense<0.000000e+00> : vector<16xf32>
    %126 = vector.multi_reduction <add>, %125, %cst_33 [1] : vector<16x32xf32> to vector<16xf32>
    %127 = vector.shape_cast %126 : vector<16xf32> to vector<16x1xf32>
    %cst_34 = arith.constant 3.200000e+01 : f32
    %128 = vector.broadcast %cst_34 : f32 to vector<16x1xf32>
    %129 = arith.divf %127, %128 : vector<16x1xf32>
    %cst_35 = arith.constant 9.99999974E-6 : f32
    %130 = vector.broadcast %cst_35 : f32 to vector<16x1xf32>
    %131 = arith.addf %129, %130 : vector<16x1xf32>
    %132 = math.rsqrt %131 : vector<16x1xf32>
    %133 = vector.broadcast %132 : vector<16x1xf32> to vector<16x32xf32>
    %134 = arith.mulf %124, %133 : vector<16x32xf32>
    %135 = vector.broadcast %117 : vector<1x32xf32> to vector<16x32xf32>
    %136 = arith.mulf %134, %135 : vector<16x32xf32>
    %137 = vector.broadcast %118 : vector<1x32xf32> to vector<16x32xf32>
    %138 = arith.addf %136, %137 : vector<16x32xf32>
    %139 = arith.addf %138, %2 : vector<16x32xf32>
    %c192 = arith.constant 192 : index
    %c0_36 = arith.constant 0 : index
    %140 = vector.load %arg4[%c192, %c0_36] : memref<320x64xf32, #tpu.memory_space<vmem>>, vector<32x32xf32>
    %cst_37 = arith.constant dense<0.000000e+00> : vector<16x32xf32>
    %141 = tpu.matmul %139, %140, %cst_37 {dimension_numbers = #tpu.dot_dimension_numbers<[1], [0], [0], [1], [0, 0, 1, 1], [], []>} : vector<16x32xf32>, vector<32x32xf32>, vector<16x32xf32> -> vector<16x32xf32>
    %142 = vector.extract_strided_slice %0 {offsets = [3, 0], sizes = [1, 32], strides = [1, 1]} : vector<16x64xf32> to vector<1x32xf32>
    %143 = vector.broadcast %142 : vector<1x32xf32> to vector<16x32xf32>
    %144 = arith.addf %141, %143 : vector<16x32xf32>
    %145 = arith.addf %3, %4 : vector<32x32xf32>
    %c224 = arith.constant 224 : index
    %c0_38 = arith.constant 0 : index
    %146 = vector.load %arg4[%c224, %c0_38] : memref<320x64xf32, #tpu.memory_space<vmem>>, vector<32x32xf32>
    %cst_39 = arith.constant dense<0.000000e+00> : vector<32x32xf32>
    %147 = tpu.matmul %145, %146, %cst_39 {dimension_numbers = #tpu.dot_dimension_numbers<[1], [0], [0], [1], [0, 0, 1, 1], [], []>} : vector<32x32xf32>, vector<32x32xf32>, vector<32x32xf32> -> vector<32x32xf32>
    %148 = vector.extract_strided_slice %0 {offsets = [4, 0], sizes = [1, 32], strides = [1, 1]} : vector<16x64xf32> to vector<1x32xf32>
    %149 = vector.broadcast %148 : vector<1x32xf32> to vector<32x32xf32>
    %150 = arith.addf %147, %149 : vector<32x32xf32>
    %c256 = arith.constant 256 : index
    %c0_40 = arith.constant 0 : index
    %151 = vector.load %arg4[%c256, %c0_40] : memref<320x64xf32, #tpu.memory_space<vmem>>, vector<32x32xf32>
    %cst_41 = arith.constant dense<0.000000e+00> : vector<32x32xf32>
    %152 = tpu.matmul %3, %151, %cst_41 {dimension_numbers = #tpu.dot_dimension_numbers<[1], [0], [0], [1], [0, 0, 1, 1], [], []>} : vector<32x32xf32>, vector<32x32xf32>, vector<32x32xf32> -> vector<32x32xf32>
    %153 = vector.extract_strided_slice %0 {offsets = [5, 0], sizes = [1, 32], strides = [1, 1]} : vector<16x64xf32> to vector<1x32xf32>
    %154 = vector.broadcast %153 : vector<1x32xf32> to vector<32x32xf32>
    %155 = arith.addf %152, %154 : vector<32x32xf32>
    %c288 = arith.constant 288 : index
    %c0_42 = arith.constant 0 : index
    %156 = vector.load %arg4[%c288, %c0_42] : memref<320x64xf32, #tpu.memory_space<vmem>>, vector<32x32xf32>
    %157 = vector.extract_strided_slice %0 {offsets = [6, 0], sizes = [1, 32], strides = [1, 1]} : vector<16x64xf32> to vector<1x32xf32>
    %158 = vector.extract_strided_slice %144 {offsets = [0, 0], sizes = [16, 8], strides = [1, 1]} : vector<16x32xf32> to vector<16x8xf32>
    %159 = vector.extract_strided_slice %144 {offsets = [0, 8], sizes = [16, 8], strides = [1, 1]} : vector<16x32xf32> to vector<16x8xf32>
    %160 = vector.extract_strided_slice %144 {offsets = [0, 16], sizes = [16, 8], strides = [1, 1]} : vector<16x32xf32> to vector<16x8xf32>
    %161 = vector.extract_strided_slice %144 {offsets = [0, 24], sizes = [16, 8], strides = [1, 1]} : vector<16x32xf32> to vector<16x8xf32>
    %162 = vector.shape_cast %158 : vector<16x8xf32> to vector<1x16x8xf32>
    %163 = vector.shape_cast %159 : vector<16x8xf32> to vector<1x16x8xf32>
    %164 = vector.shape_cast %160 : vector<16x8xf32> to vector<1x16x8xf32>
    %165 = vector.shape_cast %161 : vector<16x8xf32> to vector<1x16x8xf32>
    %166 = tpu.concatenate %162, %163, %164, %165 in 0 : vector<1x16x8xf32>, vector<1x16x8xf32>, vector<1x16x8xf32>, vector<1x16x8xf32> -> vector<4x16x8xf32>
    %167 = vector.extract_strided_slice %150 {offsets = [0, 0], sizes = [32, 8], strides = [1, 1]} : vector<32x32xf32> to vector<32x8xf32>
    %168 = vector.extract_strided_slice %150 {offsets = [0, 8], sizes = [32, 8], strides = [1, 1]} : vector<32x32xf32> to vector<32x8xf32>
    %169 = vector.extract_strided_slice %150 {offsets = [0, 16], sizes = [32, 8], strides = [1, 1]} : vector<32x32xf32> to vector<32x8xf32>
    %170 = vector.extract_strided_slice %150 {offsets = [0, 24], sizes = [32, 8], strides = [1, 1]} : vector<32x32xf32> to vector<32x8xf32>
    %171 = vector.shape_cast %167 : vector<32x8xf32> to vector<1x32x8xf32>
    %172 = vector.shape_cast %168 : vector<32x8xf32> to vector<1x32x8xf32>
    %173 = vector.shape_cast %169 : vector<32x8xf32> to vector<1x32x8xf32>
    %174 = vector.shape_cast %170 : vector<32x8xf32> to vector<1x32x8xf32>
    %175 = tpu.concatenate %171, %172, %173, %174 in 0 : vector<1x32x8xf32>, vector<1x32x8xf32>, vector<1x32x8xf32>, vector<1x32x8xf32> -> vector<4x32x8xf32>
    %176 = vector.extract_strided_slice %155 {offsets = [0, 0], sizes = [32, 8], strides = [1, 1]} : vector<32x32xf32> to vector<32x8xf32>
    %177 = vector.extract_strided_slice %155 {offsets = [0, 8], sizes = [32, 8], strides = [1, 1]} : vector<32x32xf32> to vector<32x8xf32>
    %178 = vector.extract_strided_slice %155 {offsets = [0, 16], sizes = [32, 8], strides = [1, 1]} : vector<32x32xf32> to vector<32x8xf32>
    %179 = vector.extract_strided_slice %155 {offsets = [0, 24], sizes = [32, 8], strides = [1, 1]} : vector<32x32xf32> to vector<32x8xf32>
    %180 = vector.shape_cast %176 : vector<32x8xf32> to vector<1x32x8xf32>
    %181 = vector.shape_cast %177 : vector<32x8xf32> to vector<1x32x8xf32>
    %182 = vector.shape_cast %178 : vector<32x8xf32> to vector<1x32x8xf32>
    %183 = vector.shape_cast %179 : vector<32x8xf32> to vector<1x32x8xf32>
    %184 = tpu.concatenate %180, %181, %182, %183 in 0 : vector<1x32x8xf32>, vector<1x32x8xf32>, vector<1x32x8xf32>, vector<1x32x8xf32> -> vector<4x32x8xf32>
    "tpu.trace_start"() <{level = 10 : i32, message = "hqd,hkd->hqk"}> : () -> ()
    %cst_43 = arith.constant dense<0.000000e+00> : vector<4x16x32xf32>
    %185 = tpu.matmul %166, %175, %cst_43 {dimension_numbers = #tpu.dot_dimension_numbers<[2], [2], [1], [1], [0, 0, 0, 1, 1, 1], [0], [0]>} : vector<4x16x8xf32>, vector<4x32x8xf32>, vector<4x16x32xf32> -> vector<4x16x32xf32>
    "tpu.trace_stop"() : () -> ()
    %186 = tpu.iota {dimensions = array<i32: 0>} : vector<16x32xi32>
    %187 = tpu.iota {dimensions = array<i32: 1>} : vector<16x32xi32>
    %c2_i32_44 = arith.constant 2 : i32
    %c0_i32_45 = arith.constant 0 : i32
    %188 = arith.cmpi eq, %c2_i32_44, %c0_i32_45 : i32
    %c1_i32_46 = arith.constant 1 : i32
    %189 = arith.select %188, %c1_i32_46, %c2_i32_44 : i32
    %190 = vector.broadcast %189 : i32 to vector<16x32xi32>
    %191 = arith.remsi %186, %190 : vector<16x32xi32>
    %c0_i32_47 = arith.constant 0 : i32
    %192 = vector.broadcast %c0_i32_47 : i32 to vector<16x32xi32>
    %193 = arith.cmpi ne, %191, %192 : vector<16x32xi32>
    %c0_i32_48 = arith.constant 0 : i32
    %194 = vector.broadcast %c0_i32_48 : i32 to vector<16x32xi32>
    %195 = arith.cmpi slt, %191, %194 : vector<16x32xi32>
    %c0_i32_49 = arith.constant 0 : i32
    %196 = arith.cmpi slt, %189, %c0_i32_49 : i32
    %197 = vector.broadcast %196 : i1 to vector<16x32xi1>
    %198 = vector.broadcast %197 : vector<16x32xi1> to vector<16x32xi1>
    %199 = arith.xori %195, %198 : vector<16x32xi1>
    %200 = arith.andi %199, %193 : vector<16x32xi1>
    %201 = vector.broadcast %189 : i32 to vector<16x32xi32>
    %202 = arith.addi %191, %201 : vector<16x32xi32>
    %203 = arith.select %200, %202, %191 : vector<16x32xi1>, vector<16x32xi32>
    %c2_i32_50 = arith.constant 2 : i32
    %c0_i32_51 = arith.constant 0 : i32
    %204 = arith.cmpi eq, %c2_i32_50, %c0_i32_51 : i32
    %c1_i32_52 = arith.constant 1 : i32
    %205 = arith.select %204, %c1_i32_52, %c2_i32_50 : i32
    %206 = vector.broadcast %205 : i32 to vector<16x32xi32>
    %207 = arith.remsi %187, %206 : vector<16x32xi32>
    %c0_i32_53 = arith.constant 0 : i32
    %208 = vector.broadcast %c0_i32_53 : i32 to vector<16x32xi32>
    %209 = arith.cmpi ne, %207, %208 : vector<16x32xi32>
    %c0_i32_54 = arith.constant 0 : i32
    %210 = vector.broadcast %c0_i32_54 : i32 to vector<16x32xi32>
    %211 = arith.cmpi slt, %207, %210 : vector<16x32xi32>
    %c0_i32_55 = arith.constant 0 : i32
    %212 = arith.cmpi slt, %205, %c0_i32_55 : i32
    %213 = vector.broadcast %212 : i1 to vector<16x32xi1>
    %214 = vector.broadcast %213 : vector<16x32xi1> to vector<16x32xi1>
    %215 = arith.xori %211, %214 : vector<16x32xi1>
    %216 = arith.andi %215, %209 : vector<16x32xi1>
    %217 = vector.broadcast %205 : i32 to vector<16x32xi32>
    %218 = arith.addi %207, %217 : vector<16x32xi32>
    %219 = arith.select %216, %218, %207 : vector<16x32xi1>, vector<16x32xi32>
    %220 = arith.cmpi eq, %203, %219 : vector<16x32xi32>
    %cst_56 = arith.constant 0.000000e+00 : f32
    %cst_57 = arith.constant -1.000000e+30 : f32
    %221 = vector.broadcast %cst_56 : f32 to vector<16x32xf32>
    %222 = vector.broadcast %cst_57 : f32 to vector<16x32xf32>
    %223 = arith.select %220, %221, %222 : vector<16x32xi1>, vector<16x32xf32>
    %224 = vector.shape_cast %223 : vector<16x32xf32> to vector<1x16x32xf32>
    %225 = vector.broadcast %224 : vector<1x16x32xf32> to vector<4x16x32xf32>
    %226 = arith.addf %185, %225 : vector<4x16x32xf32>
    %cst_58 = arith.constant dense<0xFF800000> : vector<4x16xf32>
    %227 = vector.multi_reduction <maximumf>, %226, %cst_58 [2] : vector<4x16x32xf32> to vector<4x16xf32>
    %228 = vector.shape_cast %227 : vector<4x16xf32> to vector<4x16x1xf32>
    %229 = vector.broadcast %228 : vector<4x16x1xf32> to vector<4x16x32xf32>
    %230 = arith.subf %226, %229 : vector<4x16x32xf32>
    %231 = math.exp %230 : vector<4x16x32xf32>
    %cst_59 = arith.constant dense<0.000000e+00> : vector<4x16xf32>
    %232 = vector.multi_reduction <add>, %231, %cst_59 [2] : vector<4x16x32xf32> to vector<4x16xf32>
    %233 = vector.shape_cast %232 : vector<4x16xf32> to vector<4x16x1xf32>
    %234 = tpu.reciprocal %233 {approx = true} : vector<4x16x1xf32> -> vector<4x16x1xf32>
    %235 = arith.mulf %233, %234 : vector<4x16x1xf32>
    %cst_60 = arith.constant 2.000000e+00 : f32
    %236 = vector.broadcast %cst_60 : f32 to vector<4x16x1xf32>
    %237 = arith.subf %236, %235 : vector<4x16x1xf32>
    %238 = arith.mulf %234, %237 : vector<4x16x1xf32>
    %239 = vector.broadcast %238 : vector<4x16x1xf32> to vector<4x16x32xf32>
    %240 = arith.mulf %231, %239 : vector<4x16x32xf32>
    "tpu.trace_start"() <{level = 10 : i32, message = "hqk,hkd->hqd"}> : () -> ()
    %cst_61 = arith.constant dense<0.000000e+00> : vector<4x16x8xf32>
    %241 = tpu.matmul %240, %184, %cst_61 {dimension_numbers = #tpu.dot_dimension_numbers<[2], [1], [1], [2], [0, 0, 0, 1, 1, 2], [0], [0]>} : vector<4x16x32xf32>, vector<4x32x8xf32>, vector<4x16x8xf32> -> vector<4x16x8xf32>
    "tpu.trace_stop"() : () -> ()
    %242 = vector.extract_strided_slice %241 {offsets = [0, 0, 0], sizes = [1, 16, 8], strides = [1, 1, 1]} : vector<4x16x8xf32> to vector<1x16x8xf32>
    %243 = vector.shape_cast %242 : vector<1x16x8xf32> to vector<16x8xf32>
    %244 = vector.extract_strided_slice %241 {offsets = [1, 0, 0], sizes = [1, 16, 8], strides = [1, 1, 1]} : vector<4x16x8xf32> to vector<1x16x8xf32>
    %245 = vector.shape_cast %244 : vector<1x16x8xf32> to vector<16x8xf32>
    %246 = vector.extract_strided_slice %241 {offsets = [2, 0, 0], sizes = [1, 16, 8], strides = [1, 1, 1]} : vector<4x16x8xf32> to vector<1x16x8xf32>
    %247 = vector.shape_cast %246 : vector<1x16x8xf32> to vector<16x8xf32>
    %248 = vector.extract_strided_slice %241 {offsets = [3, 0, 0], sizes = [1, 16, 8], strides = [1, 1, 1]} : vector<4x16x8xf32> to vector<1x16x8xf32>
    %249 = vector.shape_cast %248 : vector<1x16x8xf32> to vector<16x8xf32>
    %250 = tpu.concatenate %243, %245, %247, %249 in 1 : vector<16x8xf32>, vector<16x8xf32>, vector<16x8xf32>, vector<16x8xf32> -> vector<16x32xf32>
    %cst_62 = arith.constant dense<0.000000e+00> : vector<16x32xf32>
    %251 = tpu.matmul %250, %156, %cst_62 {dimension_numbers = #tpu.dot_dimension_numbers<[1], [0], [0], [1], [0, 0, 1, 1], [], []>} : vector<16x32xf32>, vector<32x32xf32>, vector<16x32xf32> -> vector<16x32xf32>
    %252 = vector.broadcast %157 : vector<1x32xf32> to vector<16x32xf32>
    %253 = arith.addf %251, %252 : vector<16x32xf32>
    %254 = arith.addf %138, %253 : vector<16x32xf32>
    %255 = vector.extract_strided_slice %0 {offsets = [11, 0], sizes = [1, 32], strides = [1, 1]} : vector<16x64xf32> to vector<1x32xf32>
    %256 = vector.extract_strided_slice %0 {offsets = [12, 0], sizes = [1, 32], strides = [1, 1]} : vector<16x64xf32> to vector<1x32xf32>
    %cst_63 = arith.constant dense<0.000000e+00> : vector<16xf32>
    %257 = vector.multi_reduction <add>, %254, %cst_63 [1] : vector<16x32xf32> to vector<16xf32>
    %258 = vector.shape_cast %257 : vector<16xf32> to vector<16x1xf32>
    %cst_64 = arith.constant 3.200000e+01 : f32
    %259 = vector.broadcast %cst_64 : f32 to vector<16x1xf32>
    %260 = arith.divf %258, %259 : vector<16x1xf32>
    %261 = vector.broadcast %260 : vector<16x1xf32> to vector<16x32xf32>
    %262 = arith.subf %254, %261 : vector<16x32xf32>
    %263 = arith.mulf %262, %262 : vector<16x32xf32>
    %cst_65 = arith.constant dense<0.000000e+00> : vector<16xf32>
    %264 = vector.multi_reduction <add>, %263, %cst_65 [1] : vector<16x32xf32> to vector<16xf32>
    %265 = vector.shape_cast %264 : vector<16xf32> to vector<16x1xf32>
    %cst_66 = arith.constant 3.200000e+01 : f32
    %266 = vector.broadcast %cst_66 : f32 to vector<16x1xf32>
    %267 = arith.divf %265, %266 : vector<16x1xf32>
    %cst_67 = arith.constant 9.99999974E-6 : f32
    %268 = vector.broadcast %cst_67 : f32 to vector<16x1xf32>
    %269 = arith.addf %267, %268 : vector<16x1xf32>
    %270 = math.rsqrt %269 : vector<16x1xf32>
    %271 = vector.broadcast %270 : vector<16x1xf32> to vector<16x32xf32>
    %272 = arith.mulf %262, %271 : vector<16x32xf32>
    %273 = vector.broadcast %255 : vector<1x32xf32> to vector<16x32xf32>
    %274 = arith.mulf %272, %273 : vector<16x32xf32>
    %275 = vector.broadcast %256 : vector<1x32xf32> to vector<16x32xf32>
    %276 = arith.addf %274, %275 : vector<16x32xf32>
    %c32 = arith.constant 32 : index
    %c0_68 = arith.constant 0 : index
    %277 = vector.load %arg4[%c32, %c0_68] : memref<320x64xf32, #tpu.memory_space<vmem>>, vector<32x64xf32>
    %cst_69 = arith.constant dense<0.000000e+00> : vector<16x64xf32>
    %278 = tpu.matmul %276, %277, %cst_69 {dimension_numbers = #tpu.dot_dimension_numbers<[1], [0], [0], [1], [0, 0, 1, 1], [], []>} : vector<16x32xf32>, vector<32x64xf32>, vector<16x64xf32> -> vector<16x64xf32>
    %279 = vector.extract_strided_slice %0 {offsets = [7, 0], sizes = [1, 64], strides = [1, 1]} : vector<16x64xf32> to vector<1x64xf32>
    %280 = vector.broadcast %279 : vector<1x64xf32> to vector<16x64xf32>
    %281 = arith.addf %278, %280 : vector<16x64xf32>
    %cst_70 = arith.constant 0.000000e+00 : f32
    %282 = vector.broadcast %cst_70 : f32 to vector<16x64xf32>
    %283 = arith.maximumf %281, %282 : vector<16x64xf32>
    %c64 = arith.constant 64 : index
    %c0_71 = arith.constant 0 : index
    %284 = vector.load %arg4[%c64, %c0_71] : memref<320x64xf32, #tpu.memory_space<vmem>>, vector<64x32xf32>
    %cst_72 = arith.constant dense<0.000000e+00> : vector<16x32xf32>
    %285 = tpu.matmul %283, %284, %cst_72 {dimension_numbers = #tpu.dot_dimension_numbers<[1], [0], [0], [1], [0, 0, 1, 1], [], []>} : vector<16x64xf32>, vector<64x32xf32>, vector<16x32xf32> -> vector<16x32xf32>
    %286 = vector.extract_strided_slice %0 {offsets = [8, 0], sizes = [1, 32], strides = [1, 1]} : vector<16x64xf32> to vector<1x32xf32>
    %287 = vector.broadcast %286 : vector<1x32xf32> to vector<16x32xf32>
    %288 = arith.addf %285, %287 : vector<16x32xf32>
    %289 = arith.addf %276, %288 : vector<16x32xf32>
    %290 = vector.extract_strided_slice %0 {offsets = [13, 0], sizes = [1, 32], strides = [1, 1]} : vector<16x64xf32> to vector<1x32xf32>
    %291 = vector.extract_strided_slice %0 {offsets = [14, 0], sizes = [1, 32], strides = [1, 1]} : vector<16x64xf32> to vector<1x32xf32>
    %cst_73 = arith.constant dense<0.000000e+00> : vector<16xf32>
    %292 = vector.multi_reduction <add>, %289, %cst_73 [1] : vector<16x32xf32> to vector<16xf32>
    %293 = vector.shape_cast %292 : vector<16xf32> to vector<16x1xf32>
    %cst_74 = arith.constant 3.200000e+01 : f32
    %294 = vector.broadcast %cst_74 : f32 to vector<16x1xf32>
    %295 = arith.divf %293, %294 : vector<16x1xf32>
    %296 = vector.broadcast %295 : vector<16x1xf32> to vector<16x32xf32>
    %297 = arith.subf %289, %296 : vector<16x32xf32>
    %298 = arith.mulf %297, %297 : vector<16x32xf32>
    %cst_75 = arith.constant dense<0.000000e+00> : vector<16xf32>
    %299 = vector.multi_reduction <add>, %298, %cst_75 [1] : vector<16x32xf32> to vector<16xf32>
    %300 = vector.shape_cast %299 : vector<16xf32> to vector<16x1xf32>
    %cst_76 = arith.constant 3.200000e+01 : f32
    %301 = vector.broadcast %cst_76 : f32 to vector<16x1xf32>
    %302 = arith.divf %300, %301 : vector<16x1xf32>
    %cst_77 = arith.constant 9.99999974E-6 : f32
    %303 = vector.broadcast %cst_77 : f32 to vector<16x1xf32>
    %304 = arith.addf %302, %303 : vector<16x1xf32>
    %305 = math.rsqrt %304 : vector<16x1xf32>
    %306 = vector.broadcast %305 : vector<16x1xf32> to vector<16x32xf32>
    %307 = arith.mulf %297, %306 : vector<16x32xf32>
    %308 = vector.broadcast %290 : vector<1x32xf32> to vector<16x32xf32>
    %309 = arith.mulf %307, %308 : vector<16x32xf32>
    %310 = vector.broadcast %291 : vector<1x32xf32> to vector<16x32xf32>
    %311 = arith.addf %309, %310 : vector<16x32xf32>
    %c0_78 = arith.constant 0 : index
    %c0_79 = arith.constant 0 : index
    %312 = vector.load %arg6[%c0_78, %c0_79] : memref<16x32xf32, #tpu.memory_space<vmem>>, vector<16x32xf32>
    tpu.vector_store %arg6[%c0_78, %c0_79], %311 {strides = array<i32>} : memref<16x32xf32, #tpu.memory_space<vmem>>, vector<16x32xf32>,
    return
  }
}

</mosaic_0001>

<bundles_post_ra>
// kernel: tpu_custom_call.1
= control target key start
LH: loop header
LB: loop body
LE: loop exit
PB: predicated region body
PF: predicated region fallthrough
CT: control target
= control target key end

     0   :  { %vm48_vm0 = vcmask 261120   ;;  %s4334_s0 = inlined_call_operand.vmem [shape: f32[16,32], index: 0, kind: input, shape index: {}]   ;;  %s4335_s1 = inlined_call_operand.vmem [shape: f32[16,32], index: 1, kind: input, shape index: {}]   ;;  %s4336_s2 = inlined_call_operand.vmem [shape: f32[32,32], index: 2, kind: input, shape index: {}]   ;;  %s4337_s3 = inlined_call_operand.vmem [shape: f32[32,32], index: 3, kind: input, shape index: {}]   ;;  %s4338_s4 = inlined_call_operand.vmem [shape: f32[320,64], index: 4, kind: input, shape index: {}]   ;;  %s4339_s5 = inlined_call_operand.vmem [shape: f32[16,64], index: 5, kind: input, shape index: {}]   ;;  %s4340_s6 = inlined_call_operand.hbm [shape: f32[16,32], index: 6, kind: output, shape index: {}]  }
   0x1   :  { %v40_v0 = vld [vmem:[%s4338_s4] sm:$0xff]  ;;  %v41_v1 = vld [vmem:[%s4338_s4 + $0x8] sm:$0xff]  ;;  %v42_v2 = vld [vmem:[%s4338_s4 + $0x10] sm:$0xff] }
   0x2   :  { %v3295_v3 = vpack.c.bf16 %v41_v1, %v40_v0  ;;  %v43_v4 = vld [vmem:[%s4338_s4 + $0x18] sm:$0xff]  ;;  %v3761_v5 = vld [vmem:[%s4334_s0] sm:$0xff] }
   0x3   :  { %v3766_v6 = vld [vmem:[%s4335_s1] sm:$0xff]  ;;  %v3299_v7 = vpack.c.bf16 %v43_v4, %v42_v2 }
   0x4   :  { %v38_v8 = vadd.f32 %v3766_v6, %v3761_v5  ;;  %3296 = vmatprep.subr.bf16.mxu1 %v3295_v3 }
   0x5   :  { %11 = vsyncpa [#allocation3], 0  ;;  %3298 = vmatpush3.bf16.msra.mxu1 %v3295_v3  ;;  %v3774_v9 = vld [vmem:[%s4334_s0 + $0x8] sm:$0xff]  ;;  %v130_v12 = vld [vmem:[%s4338_s4 + $0x80] sm:$0xff]  ;;  %v44_v18 = vlaneseq  ;;  %vm306_vm1 = vcmask 64512   ;;  %s3701_s21 = smov 112  }
   0x6   :  { %3046 = vmatprep.mubr.msk.f32.mxu1 %vm48_vm0, %v38_v8  ;;  %v3779_v10 = vld [vmem:[%s4335_s1 + $0x8] sm:$0xff]  ;;  %3300 = vmatprep.subr.bf16.mxu1 %v3299_v7  ;;  %v132_v14 = vld [vmem:[%s4338_s4 + $0x90] sm:$0xff]  ;;  %v133_v16 = vld [vmem:[%s4338_s4 + $0x98] sm:$0xff]  ;;  %s3702_s22 = smov 120   ;;  %s3703_s23 = smov 104   ;;  %vm651_vm5 = vcmask 130048  }
   0x7   :  { %v39_v11 = vadd.f32 %v3779_v10, %v3774_v9  ;;  %v131_v13 = vld [vmem:[%s4338_s4 + $0x88] sm:$0xff]  ;;  %v3307_v17 = vpack.c.bf16 %v133_v16, %v132_v14  ;;  %v3801_v19 = vshrl.u32 %v44_v18, 7  ;;  %v3807_v21 = vld [vmem:[%s4339_s5] sm:$0xff]  ;;  %s3704_s24 = smov 96   ;;  %vm3822_vm2 = vmpackc.low %vm306_vm1, %vm306_vm1  ;;  %v261_v62 = vand.u32 127, %v44_v18  ;;  %s3706_s9 = smov 8  }
   0x8   :  { %v3303_v15 = vpack.c.bf16 %v131_v13, %v130_v12  ;;  %v3705_v2 = vmov -1e+30   ;;  %s3707_s10 = smov 16   ;;  %s3708_s11 = smov 24   ;;  %vm1116_vm6 = vcmask 195584   ;;  %vm2678_vm7 = vcmask 523264  }
   0x9   :  { %3302 = vmatpush3.bf16.msra.mxu1 %v3299_v7  ;;  %v46_v20 = vsub.s32 0, %v3801_v19  ;;  %v136_v42 = vsub.s32 1, %v3801_v19  ;;  %v259_v61 = vadd.s32 8, %v3801_v19  ;;  %v290_v0 = vand.u32 1, %v261_v62 }
   0xa   :  { %3304 = vmatprep.subr.bf16.mxu1 %v3303_v15  ;;  %v266_v1 = vand.u32 1, %v3801_v19 }
   0xb   :  { %v47_v22 = vrot.slane %v3807_v21, %v46_v20  ;;  %v137_v45 = vrot.slane %v3807_v21, %v136_v42  ;;  %v273_v63 = vand.u32 1, %v259_v61 }
   0xc   :  { %3047 = vmatmul.mubr.msk.f32.vlgmr.msra.gmra.mrb[0].mxu1 %vm48_vm0, %v39_v11  ;;  %vm298_vm4 = vcmp.eq.s32.totalorder %v266_v1, %v290_v0 }
   0xd   :  { %3057 = vmatprep.mubr.msk.f32.mxu1 %vm48_vm0, %v3761_v5  ;;  %3306 = vmatpush3.bf16.msra.mxu1 %v3303_v15  ;;  %vm299_vm3 = vcmp.eq.s32.totalorder %v273_v63, %v290_v0  ;;  %v3863_v4 = vsel %vm298_vm4, 0.0, %v3705_v2 }
   0xe   :  { %3308 = vmatprep.subr.bf16.mxu1 %v3307_v17  ;;  %v3861_v3 = vsel %vm299_vm3, 0.0, %v3705_v2 }
  0x11   :  { %3310 = vmatpush3.bf16.msra.mxu1 %v3307_v17 }
  0x14   :  { %3058 = vmatmul.mubr.msk.f32.vlgmr.msra.gmra.mrb[2].mxu1 %vm48_vm0, %v3774_v9 }
  0xdf   :  { %v3048_v23 = vpop.f32.mrb[0].mxu1 }
  0xe0   :  { %v127_v24 = vadd.f32 %v3048_v23, %v47_v22  ;;  %v121_v25 = vpop.f32.mrb[1].mxu1 }
  0xe1   :  { %v122_v26 = vadd.f32 %v121_v25, %v47_v22 }
  0xe2   :  { %231 = vrot.lane.b32.xlu1 %v127_v24, %s3701_s21 }
  0xe3   :  { %225 = vrot.lane.b32.xlu0 %v122_v26, %s3702_s22  ;;  %3064 = vmatprep.mubr.msk.f32.mxu0 %vm306_vm1, %v122_v26  ;;  %v3505_v27 = vpack.i.bf16 %v127_v24, %v122_v26 }
  0xe6   :  { %229 = vrot.lane.b32.xlu1 %v122_v26, %s3701_s21 }
  0xe7   :  { %227 = vrot.lane.b32.xlu0 %v127_v24, %s3702_s22  ;;  %v3059_v43 = vpop.f32.mrb[2].mxu1 }
  0xe8   :  { %v210_v44 = vpop.f32.mrb[3].mxu1  ;;  %v3836_v46 = vadd.f32 %v3059_v43, %v137_v45 }
  0xe9   :  { %v3838_v47 = vadd.f32 %v210_v44, %v137_v45 }
  0xea   :  { %235 = vrot.lane.b32.xlu1 %v127_v24, %s3703_s23 }
  0xeb   :  { %233 = vrot.lane.b32.xlu0 %v122_v26, %s3703_s23  ;;  %v3335_v55 = vpack.c.bf16 %v3836_v46, %v3838_v47 }
  0xef   :  { %3506 = vrot.lane.b32.xlu0 %v3505_v27, %s3704_s24 }
 0x154   :  { %v232_v28 = vpop.permute.xlu1 %231 }
 0x155   :  { %v226_v29 = vpop.permute.xlu0 %225 }
 0x156   :  { %3071 = vmatprep.mubr.msk.f32.mxu1 %vm306_vm1, %v226_v29 }
 0x158   :  { %v230_v30 = vpop.permute.xlu1 %229 }
 0x159   :  { %v3515_v31 = vpack.i.bf16 %v232_v28, %v230_v30  ;;  %v228_v32 = vpop.permute.xlu0 %227 }
 0x15a   :  { %v3510_v33 = vpack.i.bf16 %v228_v32, %v226_v29 }
 0x15b   :  { %3516 = vrot.lane.b32.xlu0 %v3515_v31, %s3704_s24 }
 0x15c   :  { %v236_v34 = vpop.permute.xlu1 %235  ;;  %3511 = vrot.lane.b32.xlu1 %v3510_v33, %s3704_s24 }
 0x15d   :  { %v234_v35 = vpop.permute.xlu0 %233 }
 0x15e   :  { %v3520_v36 = vpack.i.bf16 %v236_v34, %v234_v35 }
 0x160   :  { %3521 = vrot.lane.b32.xlu1 %v3520_v36, %s3704_s24  ;;  %v3883_v36 = vpack.i.bf16 %v3836_v46, %v3838_v47 }
 0x161   :  { %v3507_v37 = vpop.permute.xlu0 %3506 }
 0x162   :  { %v3509_v38 = vunpack.i.h.bf16 %v3507_v37  ;;  %v3508_v39 = vunpack.i.l.bf16 %v3507_v37 }
 0x164   :  { %v3311_v41 = vpack.c.bf16 %v3509_v38, %v3508_v39 }
 0x166   :  { %3313 = vmatprep.subr.msk.bf16.mxu0 %vm3822_vm2, %v3311_v41 }
 0x167   :  { %3316 = vmatpush3.bf16.xpose.msk.msra.mxu0 %vm3822_vm2, %v3311_v41 }
 0x16e   :  { %3065 = vmatmul.mubr.msk.f32.vlgmr.msra.gmra.mrb[0].mxu0 %vm306_vm1, %v127_v24 }
 0x16f   :  { %3078 = vmatprep.mubr.msk.f32.mxu0 %vm306_vm1, %v230_v30 }
 0x1cd   :  { %v3517_v48 = vpop.permute.xlu0 %3516 }
 0x1ce   :  { %v3519_v49 = vunpack.i.h.bf16 %v3517_v48  ;;  %v3518_v50 = vunpack.i.l.bf16 %v3517_v48  ;;  %v3512_v51 = vpop.permute.xlu1 %3511 }
 0x1cf   :  { %v3514_v52 = vunpack.i.h.bf16 %v3512_v51  ;;  %v3513_v53 = vunpack.i.l.bf16 %v3512_v51 }
 0x1d0   :  { %v3323_v54 = vpack.c.bf16 %v3519_v49, %v3518_v50 }
 0x1d1   :  { %v3317_v56 = vpack.c.bf16 %v3514_v52, %v3513_v53 }
 0x1d2   :  { %v3522_v57 = vpop.permute.xlu1 %3521  ;;  %3325 = vmatprep.subr.msk.bf16.mxu0 %vm3822_vm2, %v3323_v54 }
 0x1d3   :  { %v3524_v58 = vunpack.i.h.bf16 %v3522_v57  ;;  %v3523_v59 = vunpack.i.l.bf16 %v3522_v57  ;;  %3319 = vmatprep.subr.msk.bf16.mxu1 %vm3822_vm2, %v3317_v56  ;;  %3328 = vmatpush3.bf16.xpose.msk.msra.mxu0 %vm3822_vm2, %v3323_v54 }
 0x1d4   :  { %3322 = vmatpush3.bf16.xpose.msk.msra.mxu1 %vm3822_vm2, %v3317_v56  ;;  %3336 = vmatprep.subr.bf16.mxu0 %v3335_v55 }
 0x1d5   :  { %v3329_v60 = vpack.c.bf16 %v3524_v58, %v3523_v59 }
 0x1d7   :  { %3331 = vmatprep.subr.msk.bf16.mxu1 %vm3822_vm2, %v3329_v60 }
 0x1da   :  { %3079 = vmatmul.mubr.msk.f32.vlgmr.msra.gmra.mrb[2].mxu0 %vm306_vm1, %v232_v28 }
 0x1db   :  { %3072 = vmatmul.mubr.msk.f32.vlgmr.msra.gmra.mrb[4].mxu1 %vm306_vm1, %v228_v32  ;;  %3338 = vmatpush3.bf16.msra.mxu0 %v3335_v55 }
 0x1dc   :  { %3334 = vmatpush3.bf16.xpose.msk.msra.mxu1 %vm3822_vm2, %v3329_v60  ;;  %3085 = vmatprep.mubr.msk.f32.mxu1 %vm306_vm1, %v234_v35 }
 0x1e3   :  { %3086 = vmatmul.mubr.msk.f32.vlgmr.msra.gmra.mrb[6].mxu1 %vm306_vm1, %v236_v34 }
 0x241   :  { %v3066_v7 = vpop.f32.mrb[0].mxu0 }
 0x242   :  { %v387_v8 = vadd.f32 %v3066_v7, %v3861_v3  ;;  %v381_v11 = vpop.f32.mrb[1].mxu0 }
 0x243   :  { %v382_v12 = vadd.f32 %v381_v11, %v3863_v4 }
 0x244   :  { %v655_v13 = vsel %vm651_vm5, %v387_v8, -inf }
 0x245   :  { %656 = vmax.xlane.f32.xlu1 %v655_v13  ;;  %v652_v14 = vsel %vm651_vm5, %v382_v12, -inf }
 0x246   :  { %653 = vmax.xlane.f32.xlu0 %v652_v14 }
 0x2ad   :  { %v3080_v15 = vpop.f32.mrb[2].mxu0 }
 0x2ae   :  { %v3073_v16 = vpop.f32.mrb[4].mxu1  ;;  %v555_v17 = vpop.f32.mrb[3].mxu0  ;;  %v561_v27 = vadd.f32 %v3080_v15, %v3861_v3 }
 0x2af   :  { %v474_v18 = vadd.f32 %v3073_v16, %v3861_v3  ;;  %v556_v22 = vadd.f32 %v555_v17, %v3863_v4  ;;  %v468_v23 = vpop.f32.mrb[5].mxu1 }
 0x2b0   :  { %v469_v24 = vadd.f32 %v468_v23, %v3863_v4  ;;  %v667_v33 = vsel %vm651_vm5, %v561_v27, -inf }
 0x2b1   :  { %v664_v25 = vsel %vm651_vm5, %v556_v22, -inf  ;;  %v661_v26 = vsel %vm651_vm5, %v474_v18, -inf }
 0x2b2   :  { %665 = vmax.xlane.f32.xlu1 %v664_v25  ;;  %662 = vmax.xlane.f32.xlu0 %v661_v26  ;;  %v658_v28 = vsel %vm651_vm5, %v469_v24, -inf }
 0x2b6   :  { %v3087_v29 = vpop.f32.mrb[6].mxu1  ;;  %659 = vmax.xlane.f32.xlu0 %v658_v28 }
 0x2b7   :  { %v642_v30 = vpop.f32.mrb[7].mxu1  ;;  %v648_v32 = vadd.f32 %v3087_v29, %v3861_v3 }
 0x2b8   :  { %v643_v31 = vadd.f32 %v642_v30, %v3863_v4 }
 0x2b9   :  { %v673_v35 = vsel %vm651_vm5, %v648_v32, -inf }
 0x2ba   :  { %668 = vmax.xlane.f32.xlu0 %v667_v33  ;;  %v670_v34 = vsel %vm651_vm5, %v643_v31, -inf }
 0x2bb   :  { %671 = vmax.xlane.f32.xlu1 %v670_v34 }
 0x2be   :  { %674 = vmax.xlane.f32.xlu0 %v673_v35 }
 0x2cc   :  { %3526 = vrot.lane.b32.xlu1 %v3883_v36, %s3702_s22 }
 0x2d2   :  { %v657_v37 = vpop.xlane.xlu1 %656 }
 0x2d3   :  { %v677_v38 = vsub.f32 %v387_v8, %v657_v37  ;;  %v654_v41 = vpop.xlane.xlu0 %653 }
 0x2d4   :  { %v676_v43 = vsub.f32 %v382_v12, %v654_v41 }
 0x2d5   :  { %v686_v39 = vmul.f32 1.442695, %v677_v38 }
 0x2d6   :  { %v684_v44 = vmul.f32 1.442695, %v676_v43 }
 0x2d7   :  { %3600 = vpow2.f32 %v686_v39 }
 0x2d8   :  { %3602 = vpow2.f32 %v684_v44 }
 0x2e1   :  { %v3887_v45 = vpop.eup %3600 }
 0x2e2   :  { %v703_v48 = vsel %vm651_vm5, %v3887_v45, 0.0  ;;  %v3891_v49 = vpop.eup %3602 }
 0x2e3   :  { %704 = vadd.xlane.f32.xlu0 %v703_v48  ;;  %v700_v46 = vsel %vm651_vm5, %v3891_v49, 0.0 }
 0x2f0   :  { %701 = vadd.xlane.f32.xlu1 %v700_v46 }
 0x33f   :  { %v666_v47 = vpop.xlane.xlu1 %665  ;;  %v663_v50 = vpop.xlane.xlu0 %662 }
 0x340   :  { %v679_v51 = vsub.f32 %v474_v18, %v663_v50  ;;  %v680_v52 = vsub.f32 %v556_v22, %v666_v47 }
 0x342   :  { %v690_v53 = vmul.f32 1.442695, %v679_v51  ;;  %v692_v56 = vmul.f32 1.442695, %v680_v52 }
 0x343   :  { %v660_v54 = vpop.xlane.xlu0 %659 }
 0x344   :  { %v678_v55 = vsub.f32 %v469_v24, %v660_v54  ;;  %3604 = vpow2.f32 %v690_v53 }
 0x346   :  { %v688_v57 = vmul.f32 1.442695, %v678_v55 }
 0x347   :  { %v669_v58 = vpop.xlane.xlu0 %668 }
 0x348   :  { %3606 = vpow2.f32 %v688_v57  ;;  %v681_v59 = vsub.f32 %v561_v27, %v669_v58  ;;  %v672_v60 = vpop.xlane.xlu1 %671 }
 0x349   :  { %v682_v61 = vsub.f32 %v643_v31, %v672_v60  ;;  %3608 = vpow2.f32 %v692_v56 }
 0x34a   :  { %v694_v62 = vmul.f32 1.442695, %v681_v59 }
 0x34b   :  { %v696_v63 = vmul.f32 1.442695, %v682_v61  ;;  %v675_v0 = vpop.xlane.xlu0 %674 }
 0x34c   :  { %3610 = vpow2.f32 %v694_v62  ;;  %v683_v1 = vsub.f32 %v648_v32, %v675_v0  ;;  %v3527_v2 = vpop.permute.xlu1 %3526 }
 0x34d   :  { %v3529_v7 = vunpack.i.h.bf16 %v3527_v2  ;;  %v3528_v8 = vunpack.i.l.bf16 %v3527_v2  ;;  %3612 = vpow2.f32 %v696_v63 }
 0x34e   :  { %v698_v11 = vmul.f32 1.442695, %v683_v1  ;;  %v3895_v12 = vpop.eup %3604 }
 0x34f   :  { %v3339_v13 = vpack.c.bf16 %v3529_v7, %v3528_v8  ;;  %v709_v14 = vsel %vm651_vm5, %v3895_v12, 0.0 }
 0x350   :  { %3614 = vpow2.f32 %v698_v11  ;;  %710 = vadd.xlane.f32.xlu0 %v709_v14 }
 0x351   :  { %3340 = vmatprep.subr.bf16.mxu1 %v3339_v13 }
 0x352   :  { %v3899_v15 = vpop.eup %3606  ;;  %3342 = vmatpush3.bf16.msra.mxu1 %v3339_v13 }
 0x353   :  { %v706_v16 = vsel %vm651_vm5, %v3899_v15, 0.0  ;;  %v3903_v17 = vpop.eup %3608 }
 0x354   :  { %707 = vadd.xlane.f32.xlu1 %v706_v16  ;;  %v712_v22 = vsel %vm651_vm5, %v3903_v17, 0.0 }
 0x356   :  { %v3905_v18 = vpop.eup %3610 }
 0x357   :  { %v715_v23 = vsel %vm651_vm5, %v3905_v18, 0.0  ;;  %v3911_v24 = vpop.eup %3612 }
 0x358   :  { %713 = vadd.xlane.f32.xlu1 %v712_v22  ;;  %716 = vadd.xlane.f32.xlu0 %v715_v23  ;;  %v718_v26 = vsel %vm651_vm5, %v3911_v24, 0.0 }
 0x35a   :  { %v3913_v25 = vpop.eup %3614 }
 0x35b   :  { %v721_v27 = vsel %vm651_vm5, %v3913_v25, 0.0 }
 0x35c   :  { %719 = vadd.xlane.f32.xlu1 %v718_v26  ;;  %722 = vadd.xlane.f32.xlu0 %v721_v27 }
 0x36d   :  { %3536 = vrot.lane.b32.xlu1 %v3883_v36, %s3703_s23 }
 0x370   :  { %v705_v28 = vpop.xlane.xlu0 %704 }
 0x371   :  { %3616 = vrcp.f32 %v705_v28 }
 0x372   :  { %3531 = vrot.lane.b32.xlu0 %v3883_v36, %s3701_s21 }
 0x37b   :  { %v3617_v30 = vpop.eup %3616 }
 0x37c   :  { %v733_v31 = vmul.f32 %v3617_v30, %v705_v28 }
 0x37d   :  { %v702_v29 = vpop.xlane.xlu1 %701 }
 0x37e   :  { %3618 = vrcp.f32 %v702_v29  ;;  %v741_v33 = vsub.f32 2.0, %v733_v31 }
 0x380   :  { %v749_v37 = vmul.f32 %v3617_v30, %v741_v33 }
 0x382   :  { %v757_v41 = vmul.f32 %v3887_v45, %v749_v37  ;;  %v220_v37 = vld [vmem:[%s4338_s4 + $0xa8] sm:$0xff] }
 0x388   :  { %v3619_v32 = vpop.eup %3618 }
 0x389   :  { %v732_v34 = vmul.f32 %v3619_v32, %v702_v29 }
 0x38b   :  { %v740_v35 = vsub.f32 2.0, %v732_v34 }
 0x38d   :  { %v748_v38 = vmul.f32 %v3619_v32, %v740_v35 }
 0x38f   :  { %v756_v39 = vmul.f32 %v3891_v49, %v748_v38 }
 0x391   :  { %3092 = vmatprep.mubr.msk.f32.mxu0 %vm651_vm5, %v756_v39 }
 0x392   :  { %3093 = vmatmul.mubr.msk.f32.vlgmr.msra.gmra.mrb[4].mxu0 %vm651_vm5, %v757_v41 }
 0x3dd   :  { %v711_v36 = vpop.xlane.xlu0 %710 }
 0x3de   :  { %3620 = vrcp.f32 %v711_v36 }
 0x3e1   :  { %v708_v43 = vpop.xlane.xlu1 %707 }
 0x3e2   :  { %3622 = vrcp.f32 %v708_v43 }
 0x3e5   :  { %v714_v44 = vpop.xlane.xlu1 %713  ;;  %v717_v48 = vpop.xlane.xlu0 %716 }
 0x3e6   :  { %3624 = vrcp.f32 %v714_v44 }
 0x3e7   :  { %3626 = vrcp.f32 %v717_v48 }
 0x3e8   :  { %v3621_v46 = vpop.eup %3620 }
 0x3e9   :  { %v720_v47 = vpop.xlane.xlu1 %719  ;;  %v723_v50 = vpop.xlane.xlu0 %722  ;;  %v735_v51 = vmul.f32 %v3621_v46, %v711_v36 }
 0x3ea   :  { %3628 = vrcp.f32 %v720_v47 }
 0x3eb   :  { %3630 = vrcp.f32 %v723_v50  ;;  %v743_v45 = vsub.f32 2.0, %v735_v51 }
 0x3ec   :  { %v3623_v49 = vpop.eup %3622 }
 0x3ed   :  { %v734_v52 = vmul.f32 %v3623_v49, %v708_v43  ;;  %v3537_v53 = vpop.permute.xlu1 %3536  ;;  %v3532_v54 = vpop.permute.xlu0 %3531  ;;  %v751_v61 = vmul.f32 %v3621_v46, %v743_v45 }
 0x3ee   :  { %v3539_v55 = vunpack.i.h.bf16 %v3537_v53  ;;  %v3538_v56 = vunpack.i.l.bf16 %v3537_v53  ;;  %v3534_v57 = vunpack.i.h.bf16 %v3532_v54  ;;  %v3533_v59 = vunpack.i.l.bf16 %v3532_v54 }
 0x3ef   :  { %v742_v58 = vsub.f32 2.0, %v734_v52  ;;  %v759_v14 = vmul.f32 %v3895_v12, %v751_v61 }
 0x3f0   :  { %v3625_v60 = vpop.eup %3624  ;;  %v3347_v62 = vpack.c.bf16 %v3539_v55, %v3538_v56  ;;  %v3343_v2 = vpack.c.bf16 %v3534_v57, %v3533_v59  ;;  %v1121_v59 = vsub.s32 2, %v3801_v19 }
 0x3f1   :  { %v3627_v63 = vpop.eup %3626  ;;  %v750_v0 = vmul.f32 %v3623_v49, %v742_v58  ;;  %v736_v1 = vmul.f32 %v3625_v60, %v714_v44 }
 0x3f2   :  { %v737_v7 = vmul.f32 %v3627_v63, %v717_v48  ;;  %3348 = vmatprep.subr.bf16.mxu1 %v3347_v62  ;;  %3344 = vmatprep.subr.bf16.mxu0 %v3343_v2 }
 0x3f3   :  { %v758_v8 = vmul.f32 %v3899_v15, %v750_v0  ;;  %v744_v11 = vsub.f32 2.0, %v736_v1  ;;  %3346 = vmatpush3.bf16.msra.mxu0 %v3343_v2 }
 0x3f4   :  { %v3629_v13 = vpop.eup %3628  ;;  %v745_v16 = vsub.f32 2.0, %v737_v7 }
 0x3f5   :  { %v3631_v22 = vpop.eup %3630  ;;  %v752_v23 = vmul.f32 %v3625_v60, %v744_v11  ;;  %v738_v26 = vmul.f32 %v3629_v13, %v720_v47  ;;  %3099 = vmatprep.mubr.msk.f32.mxu1 %vm651_vm5, %v758_v8  ;;  %v1122_v60 = vrot.slane %v3807_v21, %v1121_v59  ;;  %v1340_v11 = vld [vmem:[%s4338_s4 + $0xe0] sm:$0xff] }
 0x3f6   :  { %v753_v27 = vmul.f32 %v3627_v63, %v745_v16  ;;  %v739_v28 = vmul.f32 %v3631_v22, %v723_v50  ;;  %3100 = vmatmul.mubr.msk.f32.vlgmr.msra.gmra.mrb[8].mxu1 %vm651_vm5, %v759_v14  ;;  %v3988_v16 = vld [vmem:[%s4336_s2] sm:$0xff] }
 0x3f7   :  { %v760_v29 = vmul.f32 %v3903_v17, %v752_v23  ;;  %v746_v30 = vsub.f32 2.0, %v738_v26  ;;  %3350 = vmatpush3.bf16.msra.mxu1 %v3347_v62 }
 0x3f8   :  { %v761_v15 = vmul.f32 %v3905_v18, %v753_v27  ;;  %v747_v31 = vsub.f32 2.0, %v739_v28  ;;  %v219_v18 = vld [vmem:[%s4338_s4 + $0xa0] sm:$0xff]  ;;  %v3998_v27 = vld [vmem:[%s4336_s2 + $0x8] sm:$0xff] }
 0x3f9   :  { %v754_v32 = vmul.f32 %v3629_v13, %v746_v30  ;;  %3106 = vmatprep.mubr.msk.f32.mxu0 %vm651_vm5, %v760_v29  ;;  %v3351_v38 = vpack.c.bf16 %v220_v37, %v219_v18  ;;  %v1341_v13 = vld [vmem:[%s4338_s4 + $0xe8] sm:$0xff]  ;;  %v4010_v37 = vld [vmem:[%s4336_s2 + $0x10] sm:$0xff] }
 0x3fa   :  { %v755_v12 = vmul.f32 %v3631_v22, %v747_v31  ;;  %3107 = vmatmul.mubr.msk.f32.vlgmr.msra.gmra.mrb[6].mxu0 %vm651_vm5, %v761_v15  ;;  %v3367_v14 = vpack.c.bf16 %v1341_v13, %v1340_v11  ;;  %v34_v22 = vld [vmem:[%s4337_s3] sm:$0xff]  ;;  %v35_v28 = vld [vmem:[%s4337_s3 + $0x8] sm:$0xff] }
 0x3fb   :  { %v762_v33 = vmul.f32 %v3911_v24, %v754_v32  ;;  %3352 = vmatprep.subr.bf16.mxu0 %v3351_v38  ;;  %v221_v24 = vld [vmem:[%s4338_s4 + $0xb0] sm:$0xff]  ;;  %v1336_v26 = vadd.f32 %v34_v22, %v3988_v16  ;;  %v1337_v29 = vadd.f32 %v35_v28, %v3998_v27 }
 0x3fc   :  { %v763_v34 = vmul.f32 %v3913_v25, %v755_v12  ;;  %3354 = vmatpush3.bf16.msra.mxu0 %v3351_v38  ;;  %v222_v25 = vld [vmem:[%s4338_s4 + $0xb8] sm:$0xff]  ;;  %v36_v38 = vld [vmem:[%s4337_s3 + $0x10] sm:$0xff] }
 0x3fd   :  { %3113 = vmatprep.mubr.msk.f32.mxu1 %vm651_vm5, %v762_v33  ;;  %v3355_v39 = vpack.c.bf16 %v222_v25, %v221_v24  ;;  %v1338_v24 = vadd.f32 %v36_v38, %v4010_v37  ;;  %v4019_v25 = vld [vmem:[%s4336_s2 + $0x18] sm:$0xff] }
 0x3fe   :  { %3114 = vmatmul.mubr.msk.f32.vlgmr.msra.gmra.mrb[10].mxu1 %vm651_vm5, %v763_v34 }
 0x3ff   :  { %3356 = vmatprep.subr.bf16.mxu0 %v3355_v39 }
 0x400   :  { %3358 = vmatpush3.bf16.msra.mxu0 %v3355_v39  ;;  %v37_v39 = vld [vmem:[%s4337_s3 + $0x18] sm:$0xff] }
 0x401   :  { %3368 = vmatprep.subr.bf16.mxu0 %v3367_v14 }
 0x465   :  { %v3094_v17 = vpop.f32.mrb[4].mxu0 }
 0x466   :  { %v836_v35 = vpop.f32.mrb[5].mxu0 }
 0x4c9   :  { %v3101_v41 = vpop.f32.mrb[8].mxu1 }
 0x4ca   :  { %1092 = vrot.lane.b32.xlu0 %v3101_v41, %s3706_s9  ;;  %v917_v36 = vpop.f32.mrb[9].mxu1  ;;  %v1339_v41 = vadd.f32 %v37_v39, %v4019_v25 }
 0x4cb   :  { %1090 = vrot.lane.b32.xlu1 %v917_v36, %s3706_s9  ;;  %v1247_v36 = vld [vmem:[%s4338_s4 + $0xc0] sm:$0xff] }
 0x4cd   :  { %v3108_v43 = vpop.f32.mrb[6].mxu0 }
 0x4ce   :  { %1100 = vrot.lane.b32.xlu0 %v3108_v43, %s3707_s10  ;;  %v998_v44 = vpop.f32.mrb[7].mxu0  ;;  %v1248_v43 = vld [vmem:[%s4338_s4 + $0xc8] sm:$0xff] }
 0x4cf   :  { %1098 = vrot.lane.b32.xlu1 %v998_v44, %s3707_s10  ;;  %v3359_v44 = vpack.c.bf16 %v1248_v43, %v1247_v36 }
 0x4d1   :  { %v3115_v48 = vpop.f32.mrb[10].mxu1  ;;  %3360 = vmatprep.subr.bf16.mxu1 %v3359_v44 }
 0x4d2   :  { %v1079_v46 = vpop.f32.mrb[11].mxu1  ;;  %1108 = vrot.lane.b32.xlu0 %v3115_v48, %s3708_s11  ;;  %v1249_v48 = vld [vmem:[%s4338_s4 + $0xd0] sm:$0xff]  ;;  %3362 = vmatpush3.bf16.msra.mxu1 %v3359_v44 }
 0x4d3   :  { %1106 = vrot.lane.b32.xlu1 %v1079_v46, %s3708_s11  ;;  %v1250_v46 = vld [vmem:[%s4338_s4 + $0xd8] sm:$0xff] }
 0x53c   :  { %v1093_v47 = vpop.permute.xlu0 %1092 }
 0x53d   :  { %v1091_v50 = vpop.permute.xlu1 %1090  ;;  %v1113_v53 = vsel %vm306_vm1, %v3094_v17, %v1093_v47  ;;  %v3363_v47 = vpack.c.bf16 %v1250_v46, %v1249_v48 }
 0x53e   :  { %v1112_v45 = vsel %vm306_vm1, %v836_v35, %v1091_v50  ;;  %v1346_v50 = vsub.s32 4, %v3801_v19 }
 0x53f   :  { %3364 = vmatprep.subr.bf16.mxu1 %v3363_v47 }
 0x540   :  { %v1101_v51 = vpop.permute.xlu0 %1100  ;;  %3366 = vmatpush3.bf16.msra.mxu1 %v3363_v47 }
 0x541   :  { %v1099_v49 = vpop.permute.xlu1 %1098  ;;  %v1115_v56 = vsel %vm651_vm5, %v1113_v53, %v1101_v51  ;;  %v1347_v51 = vrot.slane %v3807_v21, %v1346_v50 }
 0x542   :  { %v1114_v54 = vsel %vm651_vm5, %v1112_v45, %v1099_v49 }
 0x544   :  { %v1109_v52 = vpop.permute.xlu0 %1108 }
 0x545   :  { %v1107_v55 = vpop.permute.xlu1 %1106  ;;  %v1118_v58 = vsel %vm1116_vm6, %v1115_v56, %v1109_v52 }
 0x546   :  { %v1117_v57 = vsel %vm1116_vm6, %v1114_v54, %v1107_v55 }
 0x547   :  { %3124 = vmatprep.mubr.msk.f32.mxu0 %vm48_vm0, %v1117_v57 }
 0x548   :  { %3125 = vmatmul.mubr.msk.f32.vlgmr.msra.gmra.mrb[8].mxu0 %vm48_vm0, %v1118_v58 }
 0x549   :  { %3370 = vmatpush3.bf16.msra.mxu0 %v3367_v14  ;;  %3146 = vmatprep.mubr.msk.f32.mxu0 %vm48_vm0, %v1336_v26 }
 0x61b   :  { %v3126_v61 = vpop.f32.mrb[8].mxu0 }
 0x61c   :  { %v1201_v62 = vadd.f32 %v3126_v61, %v1122_v60  ;;  %v1195_v63 = vpop.f32.mrb[9].mxu0 }
 0x61d   :  { %v1196_v0 = vadd.f32 %v1195_v63, %v1122_v60  ;;  %v4052_v63 = vld [vmem:[%s4339_s5 + $0x8] sm:$0xff] }
 0x61e   :  { %v1205_v1 = vadd.f32 %v1201_v62, %v3774_v9  ;;  %v1342_v9 = vld [vmem:[%s4338_s4 + $0xf0] sm:$0xff] }
 0x61f   :  { %v1204_v2 = vadd.f32 %v1196_v0, %v3761_v5  ;;  %v1343_v5 = vld [vmem:[%s4338_s4 + $0xf8] sm:$0xff]  ;;  %v1236_v0 = vrot.slane %v4052_v63, %v136_v42 }
 0x620   :  { %v1209_v7 = vsel %vm48_vm0, %v1205_v1, 0.0  ;;  %v3371_v23 = vpack.c.bf16 %v1343_v5, %v1342_v9 }
 0x621   :  { %1210 = vadd.xlane.f32.xlu0 %v1209_v7  ;;  %v1206_v8 = vsel %vm48_vm0, %v1204_v2, 0.0  ;;  %v1242_v7 = vrot.slane %v4052_v63, %v1121_v59 }
 0x622   :  { %1207 = vadd.xlane.f32.xlu1 %v1206_v8  ;;  %3372 = vmatprep.subr.bf16.mxu0 %v3371_v23 }
 0x623   :  { %3374 = vmatpush3.bf16.msra.mxu0 %v3371_v23 }
 0x626   :  { %3147 = vmatmul.mubr.msk.f32.vlgmr.msra.gmra.mrb[10].mxu0 %vm48_vm0, %v1337_v29 }
 0x627   :  { %3149 = vmatprep.mubr.msk.f32.mxu0 %vm48_vm0, %v1338_v24 }
 0x62a   :  { %3150 = vmatmul.mubr.msk.f32.gmra.mrb[12].mxu0 %vm48_vm0, %v1339_v41 }
 0x6ae   :  { %v1211_v30 = vpop.xlane.xlu0 %1210 }
 0x6af   :  { %v1214_v15 = vmul.f32 0.03125, %v1211_v30  ;;  %v1208_v31 = vpop.xlane.xlu1 %1207 }
 0x6b0   :  { %v1213_v32 = vmul.f32 0.03125, %v1208_v31 }
 0x6b1   :  { %v1216_v12 = vsub.f32 %v1205_v1, %v1214_v15 }
 0x6b2   :  { %v1215_v33 = vsub.f32 %v1204_v2, %v1213_v32  ;;  %v1448_v32 = vld [vmem:[%s4338_s4 + $0x118] sm:$0xff] }
 0x6b3   :  { %v1218_v34 = vmul.f32 %v1216_v12, %v1216_v12 }
 0x6b4   :  { %v1217_v17 = vmul.f32 %v1215_v33, %v1215_v33 }
 0x6b5   :  { %v1222_v35 = vsel %vm48_vm0, %v1218_v34, 0.0 }
 0x6b6   :  { %1223 = vadd.xlane.f32.xlu1 %v1222_v35  ;;  %v1219_v18 = vsel %vm48_vm0, %v1217_v17, 0.0 }
 0x6b7   :  { %1220 = vadd.xlane.f32.xlu0 %v1219_v18 }
 0x6f9   :  { %v3148_v49 = vpop.f32.mrb[10].mxu0 }
 0x6fa   :  { %v1426_v45 = vpop.f32.mrb[11].mxu0  ;;  %v1432_v52 = vadd.f32 %v3148_v49, %v1347_v51 }
 0x6fb   :  { %v1427_v53 = vadd.f32 %v1426_v45, %v1347_v51 }
 0x6fd   :  { %v3540_v54 = vpack.i.bf16 %v1432_v52, %v1427_v53  ;;  %v3383_v55 = vpack.c.bf16 %v1432_v52, %v1427_v53  ;;  %v3151_v59 = vpop.f32.mrb[12].mxu0  ;;  %v1451_v52 = vsub.s32 5, %v3801_v19 }
 0x6fe   :  { %v1442_v23 = vadd.f32 %v3151_v59, %v1347_v51  ;;  %v1436_v26 = vpop.f32.mrb[13].mxu0 }
 0x6ff   :  { %3541 = vrot.lane.b32.xlu0 %v3540_v54, %s3702_s22  ;;  %3385 = vmatprep.subr.msk.bf16.mxu0 %vm3822_vm2, %v3383_v55  ;;  %v1437_v28 = vadd.f32 %v1436_v26, %v1347_v51 }
 0x700   :  { %3388 = vmatpush3.bf16.xpose.msk.msra.mxu0 %vm3822_vm2, %v3383_v55  ;;  %v1452_v55 = vrot.slane %v3807_v21, %v1451_v52 }
 0x701   :  { %v3545_v29 = vpack.i.bf16 %v1442_v23, %v1437_v28  ;;  %v3389_v30 = vpack.c.bf16 %v1442_v23, %v1437_v28 }
 0x703   :  { %3556 = vrot.lane.b32.xlu0 %v3540_v54, %s3703_s23  ;;  %3546 = vrot.lane.b32.xlu1 %v3545_v29, %s3702_s22 }
 0x704   :  { %3391 = vmatprep.subr.msk.bf16.mxu0 %vm3822_vm2, %v3389_v30 }
 0x707   :  { %3551 = vrot.lane.b32.xlu1 %v3540_v54, %s3701_s21 }
 0x708   :  { %3394 = vmatpush3.bf16.xpose.msk.msra.mxu0 %vm3822_vm2, %v3389_v30 }
 0x743   :  { %v1224_v56 = vpop.xlane.xlu1 %1223 }
 0x744   :  { %v1226_v57 = vmul.f32 0.03125, %v1224_v56  ;;  %v1221_v58 = vpop.xlane.xlu0 %1220 }
 0x745   :  { %v1225_v60 = vmul.f32 0.03125, %v1221_v58 }
 0x746   :  { %v1228_v61 = vadd.f32 1e-05, %v1226_v57 }
 0x747   :  { %v1227_v62 = vadd.f32 1e-05, %v1225_v60 }
 0x748   :  { %3632 = vrsqrt.f32 %v1228_v61 }
 0x749   :  { %3634 = vrsqrt.f32 %v1227_v62 }
 0x752   :  { %v3633_v1 = vpop.eup %3632 }
 0x753   :  { %v3635_v2 = vpop.eup %3634  ;;  %v1232_v8 = vmul.f32 %v3633_v1, %v1216_v12 }
 0x754   :  { %v1231_v11 = vmul.f32 %v3635_v2, %v1215_v33 }
 0x755   :  { %v1238_v13 = vmul.f32 %v1236_v0, %v1232_v8 }
 0x756   :  { %v1237_v9 = vmul.f32 %v1236_v0, %v1231_v11 }
 0x757   :  { %v4060_v14 = vadd.f32 %v1242_v7, %v1238_v13 }
 0x758   :  { %v4062_v5 = vadd.f32 %v1242_v7, %v1237_v9 }
 0x759   :  { %v1246_v42 = vadd.f32 %v4060_v14, %v3779_v10  ;;  %v1446_v10 = vld [vmem:[%s4338_s4 + $0x108] sm:$0xff] }
 0x75a   :  { %v1245_v22 = vadd.f32 %v4062_v5, %v3766_v6  ;;  %v1445_v6 = vld [vmem:[%s4338_s4 + $0x100] sm:$0xff] }
 0x75b   :  { %v3375_v31 = vpack.c.bf16 %v1446_v10, %v1445_v6 }
 0x75c   :  { %3135 = vmatprep.mubr.msk.f32.mxu1 %vm48_vm0, %v1245_v22 }
 0x75d   :  { %3136 = vmatmul.mubr.msk.f32.vlgmr.msra.gmra.mrb[12].mxu1 %vm48_vm0, %v1246_v42  ;;  %3376 = vmatprep.subr.bf16.mxu1 %v3375_v31 }
 0x75e   :  { %3160 = vmatprep.mubr.msk.f32.mxu1 %vm48_vm0, %v3988_v16  ;;  %v1447_v16 = vld [vmem:[%s4338_s4 + $0x110] sm:$0xff]  ;;  %3378 = vmatpush3.bf16.msra.mxu1 %v3375_v31 }
 0x75f   :  { %v3379_v34 = vpack.c.bf16 %v1448_v32, %v1447_v16 }
 0x761   :  { %3380 = vmatprep.subr.bf16.mxu1 %v3379_v34 }
 0x762   :  { %3382 = vmatpush3.bf16.msra.mxu1 %v3379_v34 }
 0x765   :  { %3161 = vmatmul.mubr.msk.f32.vlgmr.msra.gmra.mrb[14].mxu1 %vm48_vm0, %v3998_v27 }
 0x766   :  { %3163 = vmatprep.mubr.msk.f32.mxu1 %vm48_vm0, %v4010_v37 }
 0x769   :  { %3164 = vmatmul.mubr.msk.f32.gmra.mrb[16].mxu1 %vm48_vm0, %v4019_v25  ;;  %v1253_v25 = vsub.s32 3, %v3801_v19 }
 0x76b   :  { %v1254_v46 = vrot.slane %v3807_v21, %v1253_v25 }
 0x771   :  { %v3542_v15 = vpop.permute.xlu0 %3541 }
 0x772   :  { %v3544_v12 = vunpack.i.h.bf16 %v3542_v15  ;;  %v3543_v33 = vunpack.i.l.bf16 %v3542_v15 }
 0x774   :  { %v3395_v17 = vpack.c.bf16 %v3544_v12, %v3543_v33 }
 0x775   :  { %v3557_v35 = vpop.permute.xlu0 %3556  ;;  %v3547_v24 = vpop.permute.xlu1 %3546 }
 0x776   :  { %3397 = vmatprep.subr.msk.bf16.mxu1 %vm3822_vm2, %v3395_v17  ;;  %v3559_v18 = vunpack.i.h.bf16 %v3557_v35  ;;  %v3558_v38 = vunpack.i.l.bf16 %v3557_v35  ;;  %v3549_v39 = vunpack.i.h.bf16 %v3547_v24  ;;  %v3548_v41 = vunpack.i.l.bf16 %v3547_v24 }
 0x777   :  { %3400 = vmatpush3.bf16.xpose.msk.msra.mxu1 %vm3822_vm2, %v3395_v17 }
 0x778   :  { %v3401_v36 = vpack.c.bf16 %v3549_v39, %v3548_v41  ;;  %v3419_v43 = vpack.c.bf16 %v3559_v18, %v3558_v38 }
 0x779   :  { %v3552_v44 = vpop.permute.xlu1 %3551 }
 0x77a   :  { %v3554_v48 = vunpack.i.h.bf16 %v3552_v44  ;;  %v3553_v27 = vunpack.i.l.bf16 %v3552_v44  ;;  %3403 = vmatprep.subr.msk.bf16.mxu1 %vm3822_vm2, %v3401_v36 }
 0x77c   :  { %v3407_v37 = vpack.c.bf16 %v3554_v48, %v3553_v27 }
 0x77e   :  { %3409 = vmatprep.subr.msk.bf16.mxu0 %vm3822_vm2, %v3407_v37 }
 0x77f   :  { %3406 = vmatpush3.bf16.xpose.msk.msra.mxu1 %vm3822_vm2, %v3401_v36 }
 0x780   :  { %3421 = vmatprep.subr.msk.bf16.mxu1 %vm3822_vm2, %v3419_v43 }
 0x830   :  { %v3137_v47 = vpop.f32.mrb[12].mxu1 }
 0x831   :  { %v1333_v51 = vadd.f32 %v3137_v47, %v1254_v46  ;;  %v1327_v49 = vpop.f32.mrb[13].mxu1 }
 0x832   :  { %v1328_v45 = vadd.f32 %v1327_v49, %v1254_v46 }
 0x833   :  { %1558 = vrot.lane.b32.xlu0 %v1333_v51, %s3702_s22 }
 0x834   :  { %1556 = vrot.lane.b32.xlu1 %v1328_v45, %s3702_s22  ;;  %3174 = vmatprep.mubr.msk.f32.mxu0 %vm306_vm1, %v1328_v45 }
 0x835   :  { %3175 = vmatmul.mubr.msk.f32.vlgmr.msra.gmra.mrb[14].mxu0 %vm306_vm1, %v1333_v51 }
 0x836   :  { %3412 = vmatpush3.bf16.xpose.msk.msra.mxu0 %vm3822_vm2, %v3407_v37 }
 0x837   :  { %3566 = vrot.lane.b32.xlu0 %v3545_v29, %s3703_s23 }
 0x838   :  { %3561 = vrot.lane.b32.xlu1 %v3545_v29, %s3701_s21  ;;  %v3162_v53 = vpop.f32.mrb[14].mxu1 }
 0x839   :  { %v1531_v54 = vpop.f32.mrb[15].mxu1  ;;  %v1537_v1 = vadd.f32 %v3162_v53, %v1452_v55 }
 0x83a   :  { %v1532_v2 = vadd.f32 %v1531_v54, %v1452_v55 }
 0x83b   :  { %1562 = vrot.lane.b32.xlu0 %v1333_v51, %s3701_s21 }
 0x83c   :  { %1560 = vrot.lane.b32.xlu1 %v1328_v45, %s3701_s21  ;;  %v3165_v56 = vpop.f32.mrb[16].mxu1  ;;  %v3431_v42 = vpack.c.bf16 %v1537_v1, %v1532_v2  ;;  %v3580_v47 = vpack.i.bf16 %v1537_v1, %v1532_v2 }
 0x83d   :  { %v1547_v57 = vadd.f32 %v3165_v56, %v1452_v55  ;;  %v1541_v58 = vpop.f32.mrb[17].mxu1 }
 0x83e   :  { %v1542_v60 = vadd.f32 %v1541_v58, %v1452_v55 }
 0x83f   :  { %1566 = vrot.lane.b32.xlu0 %v1333_v51, %s3703_s23 }
 0x840   :  { %1564 = vrot.lane.b32.xlu1 %v1328_v45, %s3703_s23  ;;  %v3435_v29 = vpack.c.bf16 %v1547_v57, %v1542_v60  ;;  %v4144_v30 = vpack.i.bf16 %v1547_v57, %v1542_v60 }
 0x8a5   :  { %v1559_v61 = vpop.permute.xlu0 %1558 }
 0x8a6   :  { %v1557_v62 = vpop.permute.xlu1 %1556 }
 0x8a7   :  { %3185 = vmatprep.mubr.msk.f32.mxu1 %vm306_vm1, %v1557_v62 }
 0x8a8   :  { %3186 = vmatmul.mubr.msk.f32.vlgmr.msra.gmra.mrb[18].mxu1 %vm306_vm1, %v1559_v61 }
 0x8a9   :  { %3424 = vmatpush3.bf16.xpose.msk.msra.mxu1 %vm3822_vm2, %v3419_v43  ;;  %v3567_v0 = vpop.permute.xlu0 %3566 }
 0x8aa   :  { %v3569_v7 = vunpack.i.h.bf16 %v3567_v0  ;;  %v3568_v8 = vunpack.i.l.bf16 %v3567_v0  ;;  %v3562_v11 = vpop.permute.xlu1 %3561 }
 0x8ab   :  { %v3564_v21 = vunpack.i.h.bf16 %v3562_v11  ;;  %v3563_v13 = vunpack.i.l.bf16 %v3562_v11 }
 0x8ac   :  { %v3425_v9 = vpack.c.bf16 %v3569_v7, %v3568_v8 }
 0x8ad   :  { %v3413_v22 = vpack.c.bf16 %v3564_v21, %v3563_v13  ;;  %v1563_v23 = vpop.permute.xlu0 %1562 }
 0x8ae   :  { %v1561_v59 = vpop.permute.xlu1 %1560  ;;  %3427 = vmatprep.subr.msk.bf16.mxu1 %vm3822_vm2, %v3425_v9 }
 0x8af   :  { %3415 = vmatprep.subr.msk.bf16.mxu0 %vm3822_vm2, %v3413_v22  ;;  %3196 = vmatprep.mubr.msk.f32.mxu0 %vm306_vm1, %v1561_v59 }
 0x8b0   :  { %3418 = vmatpush3.bf16.xpose.msk.msra.mxu0 %vm3822_vm2, %v3413_v22 }
 0x8b1   :  { %3430 = vmatpush3.bf16.xpose.msk.msra.mxu1 %vm3822_vm2, %v3425_v9  ;;  %3432 = vmatprep.subr.bf16.mxu0 %v3431_v42  ;;  %v1567_v28 = vpop.permute.xlu0 %1566 }
 0x8b2   :  { %v1565_v26 = vpop.permute.xlu1 %1564 }
 0x8b3   :  { %3207 = vmatprep.mubr.msk.f32.mxu1 %vm306_vm1, %v1565_v26 }
 0x8b7   :  { %3197 = vmatmul.mubr.msk.f32.vlgmr.msra.gmra.mrb[16].mxu0 %vm306_vm1, %v1563_v23 }
 0x8b8   :  { %3208 = vmatmul.mubr.msk.f32.vlgmr.msra.gmra.mrb[20].mxu1 %vm306_vm1, %v1567_v28  ;;  %3434 = vmatpush3.bf16.msra.mxu0 %v3431_v42 }
 0x8b9   :  { %3436 = vmatprep.subr.bf16.mxu0 %v3435_v29 }
 0x8bc   :  { %3438 = vmatpush3.bf16.msra.mxu0 %v3435_v29 }
 0x908   :  { %v3176_v6 = vpop.f32.mrb[14].mxu0 }
 0x909   :  { %v1720_v10 = vadd.f32 %v3176_v6, %v3861_v3  ;;  %v1714_v40 = vpop.f32.mrb[15].mxu0 }
 0x90a   :  { %v1715_v16 = vadd.f32 %v1714_v40, %v3863_v4 }
 0x90b   :  { %v1987_v15 = vsel %vm48_vm0, %v1720_v10, -inf }
 0x90c   :  { %1988 = vmax.xlane.f32.xlu0 %v1987_v15  ;;  %v1984_v31 = vsel %vm48_vm0, %v1715_v16, -inf }
 0x90d   :  { %1985 = vmax.xlane.f32.xlu1 %v1984_v31 }
 0x97b   :  { %v3187_v32 = vpop.f32.mrb[18].mxu1 }
 0x97c   :  { %v1807_v12 = vadd.f32 %v3187_v32, %v3861_v3  ;;  %v1801_v33 = vpop.f32.mrb[19].mxu1 }
 0x97d   :  { %v1802_v34 = vadd.f32 %v1801_v33, %v3863_v4 }
 0x97e   :  { %v1993_v17 = vsel %vm48_vm0, %v1807_v12, -inf }
 0x97f   :  { %1994 = vmax.xlane.f32.xlu1 %v1993_v17  ;;  %v1990_v35 = vsel %vm48_vm0, %v1802_v34, -inf }
 0x980   :  { %1991 = vmax.xlane.f32.xlu0 %v1990_v35 }
 0x98a   :  { %v3198_v18 = vpop.f32.mrb[16].mxu0 }
 0x98b   :  { %v1894_v38 = vadd.f32 %v3198_v18, %v3861_v3  ;;  %v3209_v24 = vpop.f32.mrb[20].mxu1  ;;  %v1888_v39 = vpop.f32.mrb[17].mxu0 }
 0x98c   :  { %v1889_v41 = vadd.f32 %v1888_v39, %v3863_v4  ;;  %v1975_v36 = vpop.f32.mrb[21].mxu1  ;;  %v1981_v43 = vadd.f32 %v3209_v24, %v3861_v3 }
 0x98d   :  { %v1999_v44 = vsel %vm48_vm0, %v1894_v38, -inf  ;;  %v1976_v48 = vadd.f32 %v1975_v36, %v3863_v4 }
 0x98e   :  { %2000 = vmax.xlane.f32.xlu1 %v1999_v44  ;;  %v1996_v27 = vsel %vm48_vm0, %v1889_v41, -inf  ;;  %v2005_v37 = vsel %vm48_vm0, %v1981_v43, -inf }
 0x98f   :  { %1997 = vmax.xlane.f32.xlu0 %v1996_v27  ;;  %v2002_v46 = vsel %vm48_vm0, %v1976_v48, -inf }
 0x992   :  { %2006 = vmax.xlane.f32.xlu1 %v2005_v37 }
 0x993   :  { %2003 = vmax.xlane.f32.xlu0 %v2002_v46 }
 0x999   :  { %v1989_v3 = vpop.xlane.xlu0 %1988 }
 0x99a   :  { %v1986_v4 = vpop.xlane.xlu1 %1985  ;;  %v2009_v51 = vsub.f32 %v1720_v10, %v1989_v3 }
 0x99b   :  { %v2008_v49 = vsub.f32 %v1715_v16, %v1986_v4 }
 0x99c   :  { %v2018_v45 = vmul.f32 1.442695, %v2009_v51 }
 0x99d   :  { %v2016_v53 = vmul.f32 1.442695, %v2008_v49 }
 0x99e   :  { %3636 = vpow2.f32 %v2018_v45 }
 0x99f   :  { %3638 = vpow2.f32 %v2016_v53 }
 0x9a3   :  { %3576 = vrot.lane.b32.xlu1 %v4144_v30, %s3702_s22 }
 0x9a7   :  { %3581 = vrot.lane.b32.xlu1 %v3580_v47, %s3701_s21 }
 0x9a8   :  { %v4167_v54 = vpop.eup %3636 }
 0x9a9   :  { %3571 = vrot.lane.b32.xlu0 %v3580_v47, %s3702_s22  ;;  %v4169_v55 = vpop.eup %3638  ;;  %v2035_v56 = vsel %vm48_vm0, %v4167_v54, 0.0 }
 0x9aa   :  { %v2032_v57 = vsel %vm48_vm0, %v4169_v55, 0.0 }
 0x9ad   :  { %3586 = vrot.lane.b32.xlu0 %v3580_v47, %s3703_s23 }
 0x9cb   :  { %2036 = vadd.xlane.f32.xlu1 %v2035_v56 }
 0x9cc   :  { %2033 = vadd.xlane.f32.xlu0 %v2032_v57 }
 0xa0c   :  { %v1995_v58 = vpop.xlane.xlu1 %1994 }
 0xa0d   :  { %v2011_v60 = vsub.f32 %v1807_v12, %v1995_v58  ;;  %v1992_v61 = vpop.xlane.xlu0 %1991 }
 0xa0e   :  { %v2010_v62 = vsub.f32 %v1802_v34, %v1992_v61 }
 0xa0f   :  { %v2022_v0 = vmul.f32 1.442695, %v2011_v60 }
 0xa10   :  { %v2020_v1 = vmul.f32 1.442695, %v2010_v62 }
 0xa11   :  { %3640 = vpow2.f32 %v2022_v0 }
 0xa12   :  { %3642 = vpow2.f32 %v2020_v1 }
 0xa1b   :  { %v4175_v2 = vpop.eup %3640  ;;  %v2001_v7 = vpop.xlane.xlu1 %2000 }
 0xa1c   :  { %v4177_v8 = vpop.eup %3642  ;;  %v2013_v11 = vsub.f32 %v1894_v38, %v2001_v7  ;;  %v1998_v21 = vpop.xlane.xlu0 %1997  ;;  %v2041_v13 = vsel %vm48_vm0, %v4175_v2, 0.0 }
 0xa1d   :  { %v2012_v9 = vsub.f32 %v1889_v41, %v1998_v21  ;;  %2042 = vadd.xlane.f32.xlu1 %v2041_v13  ;;  %v2038_v22 = vsel %vm48_vm0, %v4177_v8, 0.0 }
 0xa1e   :  { %v2026_v42 = vmul.f32 1.442695, %v2013_v11  ;;  %2039 = vadd.xlane.f32.xlu0 %v2038_v22 }
 0xa1f   :  { %v2024_v59 = vmul.f32 1.442695, %v2012_v9  ;;  %v2007_v23 = vpop.xlane.xlu1 %2006 }
 0xa20   :  { %3644 = vpow2.f32 %v2026_v42  ;;  %v2015_v26 = vsub.f32 %v1981_v43, %v2007_v23  ;;  %v2004_v28 = vpop.xlane.xlu0 %2003 }
 0xa21   :  { %3646 = vpow2.f32 %v2024_v59  ;;  %v2014_v29 = vsub.f32 %v1976_v48, %v2004_v28 }
 0xa22   :  { %v2030_v6 = vmul.f32 1.442695, %v2015_v26 }
 0xa23   :  { %v2028_v10 = vmul.f32 1.442695, %v2014_v29  ;;  %v3577_v40 = vpop.permute.xlu1 %3576 }
 0xa24   :  { %3648 = vpow2.f32 %v2030_v6  ;;  %v3579_v16 = vunpack.i.h.bf16 %v3577_v40  ;;  %v3572_v15 = vpop.permute.xlu0 %3571  ;;  %v3578_v31 = vunpack.i.l.bf16 %v3577_v40 }
 0xa25   :  { %3650 = vpow2.f32 %v2028_v10  ;;  %v3574_v32 = vunpack.i.h.bf16 %v3572_v15  ;;  %v3573_v12 = vunpack.i.l.bf16 %v3572_v15 }
 0xa26   :  { %v3443_v38 = vpack.c.bf16 %v3579_v16, %v3578_v31 }
 0xa27   :  { %v3439_v33 = vpack.c.bf16 %v3574_v32, %v3573_v12  ;;  %v3582_v34 = vpop.permute.xlu1 %3581 }
 0xa28   :  { %v3584_v17 = vunpack.i.h.bf16 %v3582_v34  ;;  %v3583_v35 = vunpack.i.l.bf16 %v3582_v34  ;;  %v3587_v18 = vpop.permute.xlu0 %3586 }
 0xa29   :  { %v3589_v24 = vunpack.i.h.bf16 %v3587_v18  ;;  %v3588_v39 = vunpack.i.l.bf16 %v3587_v18  ;;  %3440 = vmatprep.subr.bf16.mxu1 %v3439_v33 }
 0xa2a   :  { %v4183_v41 = vpop.eup %3644  ;;  %v3447_v36 = vpack.c.bf16 %v3584_v17, %v3583_v35  ;;  %3442 = vmatpush3.bf16.msra.mxu1 %v3439_v33 }
 0xa2b   :  { %v4185_v43 = vpop.eup %3646  ;;  %3444 = vmatprep.subr.bf16.mxu1 %v3443_v38  ;;  %v2047_v44 = vsel %vm48_vm0, %v4183_v41, 0.0  ;;  %v3455_v27 = vpack.c.bf16 %v3589_v24, %v3588_v39 }
 0xa2c   :  { %2048 = vadd.xlane.f32.xlu1 %v2047_v44  ;;  %3448 = vmatprep.subr.bf16.mxu0 %v3447_v36  ;;  %v2044_v48 = vsel %vm48_vm0, %v4185_v43, 0.0 }
 0xa2d   :  { %2045 = vadd.xlane.f32.xlu0 %v2044_v48 }
 0xa2e   :  { %v4191_v37 = vpop.eup %3648  ;;  %3446 = vmatpush3.bf16.msra.mxu1 %v3443_v38 }
 0xa2f   :  { %v4193_v46 = vpop.eup %3650  ;;  %3456 = vmatprep.subr.bf16.mxu1 %v3455_v27  ;;  %v2053_v47 = vsel %vm48_vm0, %v4191_v37, 0.0 }
 0xa30   :  { %2054 = vadd.xlane.f32.xlu1 %v2053_v47  ;;  %v2050_v3 = vsel %vm48_vm0, %v4193_v46, 0.0 }
 0xa31   :  { %2051 = vadd.xlane.f32.xlu0 %v2050_v3 }
 0xa41   :  { %3591 = vrot.lane.b32.xlu1 %v4144_v30, %s3701_s21 }
 0xa47   :  { %3596 = vrot.lane.b32.xlu0 %v4144_v30, %s3703_s23 }
 0xa58   :  { %v2037_v4 = vpop.xlane.xlu1 %2036 }
 0xa59   :  { %3652 = vrcp.f32 %v2037_v4  ;;  %v2034_v51 = vpop.xlane.xlu0 %2033 }
 0xa5a   :  { %3654 = vrcp.f32 %v2034_v51 }
 0xa63   :  { %v3653_v49 = vpop.eup %3652 }
 0xa64   :  { %v3655_v45 = vpop.eup %3654  ;;  %v2065_v53 = vmul.f32 %v3653_v49, %v2037_v4 }
 0xa65   :  { %v2064_v56 = vmul.f32 %v3655_v45, %v2034_v51 }
 0xa66   :  { %v2073_v57 = vsub.f32 2.0, %v2065_v53 }
 0xa67   :  { %v2072_v58 = vsub.f32 2.0, %v2064_v56 }
 0xa68   :  { %v2081_v60 = vmul.f32 %v3653_v49, %v2073_v57 }
 0xa69   :  { %v2080_v61 = vmul.f32 %v3655_v45, %v2072_v58  ;;  %v1552_v58 = vld [vmem:[%s4338_s4 + $0x130] sm:$0xff] }
 0xa6a   :  { %v2089_v0 = vmul.f32 %v4167_v54, %v2081_v60  ;;  %v1553_v60 = vld [vmem:[%s4338_s4 + $0x138] sm:$0xff] }
 0xa6b   :  { %v2088_v62 = vmul.f32 %v4169_v55, %v2080_v61  ;;  %v3467_v61 = vpack.c.bf16 %v1553_v60, %v1552_v58 }
 0xa6d   :  { %3218 = vmatprep.mubr.msk.f32.mxu0 %vm48_vm0, %v2088_v62 }
 0xa6e   :  { %3219 = vmatmul.mubr.msk.f32.vlgmr.msra.gmra.mrb[18].mxu0 %vm48_vm0, %v2089_v0 }
 0xa6f   :  { %3450 = vmatpush3.bf16.msra.mxu0 %v3447_v36 }
 0xaaa   :  { %v2043_v30 = vpop.xlane.xlu1 %2042 }
 0xaab   :  { %3656 = vrcp.f32 %v2043_v30  ;;  %v2040_v1 = vpop.xlane.xlu0 %2039 }
 0xaac   :  { %3658 = vrcp.f32 %v2040_v1 }
 0xab5   :  { %v3657_v7 = vpop.eup %3656 }
 0xab6   :  { %v3659_v11 = vpop.eup %3658  ;;  %v2067_v21 = vmul.f32 %v3657_v7, %v2043_v30 }
 0xab7   :  { %v2066_v13 = vmul.f32 %v3659_v11, %v2040_v1 }
 0xab8   :  { %v2075_v9 = vsub.f32 2.0, %v2067_v21 }
 0xab9   :  { %v2074_v22 = vsub.f32 2.0, %v2066_v13  ;;  %v2049_v42 = vpop.xlane.xlu1 %2048 }
 0xaba   :  { %v2083_v59 = vmul.f32 %v3657_v7, %v2075_v9  ;;  %3660 = vrcp.f32 %v2049_v42  ;;  %v2046_v55 = vpop.xlane.xlu0 %2045 }
 0xabb   :  { %v2082_v54 = vmul.f32 %v3659_v11, %v2074_v22  ;;  %3662 = vrcp.f32 %v2046_v55 }
 0xabc   :  { %v2091_v28 = vmul.f32 %v4175_v2, %v2083_v59 }
 0xabd   :  { %v2090_v23 = vmul.f32 %v4177_v8, %v2082_v54  ;;  %v2055_v26 = vpop.xlane.xlu1 %2054 }
 0xabe   :  { %3664 = vrcp.f32 %v2055_v26  ;;  %v2052_v29 = vpop.xlane.xlu0 %2051 }
 0xabf   :  { %3666 = vrcp.f32 %v2052_v29  ;;  %3229 = vmatprep.mubr.msk.f32.mxu1 %vm48_vm0, %v2090_v23 }
 0xac0   :  { %3230 = vmatmul.mubr.msk.f32.vlgmr.msra.gmra.mrb[22].mxu1 %vm48_vm0, %v2091_v28  ;;  %v2452_v28 = vsub.s32 6, %v3801_v19 }
 0xac1   :  { %3458 = vmatpush3.bf16.msra.mxu1 %v3455_v27  ;;  %v3592_v6 = vpop.permute.xlu1 %3591 }
 0xac2   :  { %v3594_v10 = vunpack.i.h.bf16 %v3592_v6  ;;  %v3593_v40 = vunpack.i.l.bf16 %v3592_v6  ;;  %v3597_v16 = vpop.permute.xlu0 %3596 }
 0xac3   :  { %v3599_v15 = vunpack.i.h.bf16 %v3597_v16  ;;  %v3598_v31 = vunpack.i.l.bf16 %v3597_v16 }
 0xac4   :  { %v3661_v32 = vpop.eup %3660  ;;  %v3451_v12 = vpack.c.bf16 %v3594_v10, %v3593_v40 }
 0xac5   :  { %v3663_v8 = vpop.eup %3662  ;;  %v2069_v33 = vmul.f32 %v3661_v32, %v2049_v42  ;;  %v3459_v34 = vpack.c.bf16 %v3599_v15, %v3598_v31 }
 0xac6   :  { %v2068_v2 = vmul.f32 %v3663_v8, %v2046_v55  ;;  %3452 = vmatprep.subr.bf16.mxu0 %v3451_v12 }
 0xac7   :  { %v2077_v17 = vsub.f32 2.0, %v2069_v33  ;;  %3454 = vmatpush3.bf16.msra.mxu0 %v3451_v12  ;;  %3460 = vmatprep.subr.bf16.mxu1 %v3459_v34 }
 0xac8   :  { %v3665_v35 = vpop.eup %3664  ;;  %v2076_v18 = vsub.f32 2.0, %v2068_v2  ;;  %3462 = vmatpush3.bf16.msra.mxu1 %v3459_v34 }
 0xac9   :  { %v3667_v38 = vpop.eup %3666  ;;  %v2085_v24 = vmul.f32 %v3661_v32, %v2077_v17  ;;  %v2071_v39 = vmul.f32 %v3665_v35, %v2055_v26 }
 0xaca   :  { %v2084_v36 = vmul.f32 %v3663_v8, %v2076_v18  ;;  %v2070_v44 = vmul.f32 %v3667_v38, %v2052_v29  ;;  %v4249_v29 = vld [vmem:[%s4339_s5] sm:$0xff] }
 0xacb   :  { %v2079_v48 = vsub.f32 2.0, %v2071_v39  ;;  %v2093_v3 = vmul.f32 %v4183_v41, %v2085_v24  ;;  %v1550_v41 = vld [vmem:[%s4338_s4 + $0x120] sm:$0xff]  ;;  %v2453_v6 = vrot.slane %v4249_v29, %v2452_v28 }
 0xacc   :  { %v2092_v27 = vmul.f32 %v4185_v43, %v2084_v36  ;;  %v2078_v47 = vsub.f32 2.0, %v2070_v44  ;;  %v1551_v43 = vld [vmem:[%s4338_s4 + $0x128] sm:$0xff] }
 0xacd   :  { %v2087_v4 = vmul.f32 %v3665_v35, %v2079_v48  ;;  %v3463_v57 = vpack.c.bf16 %v1551_v43, %v1550_v41  ;;  %v2576_v36 = vld [vmem:[%s4338_s4 + $0x28] sm:$0xff]  ;;  %v2577_v48 = vld [vmem:[%s4338_s4 + $0x30] sm:$0xff] }
 0xace   :  { %v2086_v51 = vmul.f32 %v3667_v38, %v2078_v47  ;;  %3240 = vmatprep.mubr.msk.f32.mxu0 %vm48_vm0, %v2092_v27  ;;  %v2578_v27 = vld [vmem:[%s4338_s4 + $0x38] sm:$0xff]  ;;  %v2671_v41 = vld [vmem:[%s4338_s4 + $0x68] sm:$0xff] }
 0xacf   :  { %3241 = vmatmul.mubr.msk.f32.vlgmr.msra.gmra.mrb[20].mxu0 %vm48_vm0, %v2093_v3  ;;  %v2095_v45 = vmul.f32 %v4191_v37, %v2087_v4  ;;  %3464 = vmatprep.subr.bf16.mxu0 %v3463_v57  ;;  %v3475_v47 = vpack.c.bf16 %v2578_v27, %v2577_v48  ;;  %v2666_v3 = vld [vmem:[%s4338_s4 + $0x40] sm:$0xff]  ;;  %v2667_v4 = vld [vmem:[%s4338_s4 + $0x48] sm:$0xff] }
 0xad0   :  { %v2094_v49 = vmul.f32 %v4193_v46, %v2086_v51  ;;  %3466 = vmatpush3.bf16.msra.mxu0 %v3463_v57  ;;  %v2668_v51 = vld [vmem:[%s4338_s4 + $0x50] sm:$0xff] }
 0xad1   :  { %3468 = vmatprep.subr.bf16.mxu0 %v3467_v61 }
 0xad2   :  { %3251 = vmatprep.mubr.msk.f32.mxu1 %vm48_vm0, %v2094_v49  ;;  %v3479_v49 = vpack.c.bf16 %v2667_v4, %v2666_v3  ;;  %v2791_v4 = vrot.slane %v4052_v63, %v1451_v52 }
 0xad3   :  { %3252 = vmatmul.mubr.msk.f32.vlgmr.msra.gmra.mrb[24].mxu1 %vm48_vm0, %v2095_v45  ;;  %v2669_v45 = vld [vmem:[%s4338_s4 + $0x58] sm:$0xff] }
 0xad4   :  { %3470 = vmatpush3.bf16.msra.mxu0 %v3467_v61 }
 0xad5   :  { %3480 = vmatprep.subr.bf16.mxu0 %v3479_v49 }
 0xb41   :  { %v3220_v53 = vpop.f32.mrb[18].mxu0 }
 0xb42   :  { %v2168_v56 = vpop.f32.mrb[19].mxu0 }
 0xb93   :  { %v3231_v46 = vpop.f32.mrb[22].mxu1 }
 0xb94   :  { %2424 = vrot.lane.b32.xlu0 %v3231_v46, %s3706_s9  ;;  %v2249_v37 = vpop.f32.mrb[23].mxu1 }
 0xb95   :  { %2422 = vrot.lane.b32.xlu1 %v2249_v37, %s3706_s9 }
 0xba2   :  { %v3242_v62 = vpop.f32.mrb[20].mxu0 }
 0xba3   :  { %v2330_v0 = vpop.f32.mrb[21].mxu0  ;;  %2432 = vrot.lane.b32.xlu0 %v3242_v62, %s3707_s10  ;;  %v2566_v62 = vrot.slane %v4052_v63, %v1253_v25  ;;  %v2672_v25 = vld [vmem:[%s4338_s4 + $0x70] sm:$0xff] }
 0xba4   :  { %2430 = vrot.lane.b32.xlu1 %v2330_v0, %s3707_s10 }
 0xba6   :  { %v3253_v30 = vpop.f32.mrb[24].mxu1 }
 0xba7   :  { %2440 = vrot.lane.b32.xlu0 %v3253_v30, %s3708_s11  ;;  %v2411_v1 = vpop.f32.mrb[25].mxu1 }
 0xba8   :  { %2438 = vrot.lane.b32.xlu1 %v2411_v1, %s3708_s11 }
 0xc06   :  { %v2425_v7 = vpop.permute.xlu0 %2424 }
 0xc07   :  { %v2423_v11 = vpop.permute.xlu1 %2422  ;;  %v2445_v42 = vsel %vm306_vm1, %v3220_v53, %v2425_v7  ;;  %v3483_v53 = vpack.c.bf16 %v2669_v45, %v2668_v51  ;;  %v2797_v45 = vrot.slane %v4052_v63, %v2452_v28 }
 0xc08   :  { %v2444_v9 = vsel %vm306_vm1, %v2168_v56, %v2423_v11  ;;  %v2670_v56 = vld [vmem:[%s4338_s4 + $0x60] sm:$0xff]  ;;  %v2572_v11 = vrot.slane %v4052_v63, %v1346_v50  ;;  %v2581_v50 = vsub.s32 7, %v3801_v19 }
 0xc09   :  { %v3487_v43 = vpack.c.bf16 %v2671_v41, %v2670_v56 }
 0xc15   :  { %v2433_v21 = vpop.permute.xlu0 %2432 }
 0xc16   :  { %v2431_v13 = vpop.permute.xlu1 %2430  ;;  %v2447_v54 = vsel %vm651_vm5, %v2445_v42, %v2433_v21  ;;  %v2673_v42 = vld [vmem:[%s4338_s4 + $0x78] sm:$0xff] }
 0xc17   :  { %v2446_v59 = vsel %vm651_vm5, %v2444_v9, %v2431_v13 }
 0xc19   :  { %v2441_v22 = vpop.permute.xlu0 %2440 }
 0xc1a   :  { %v2439_v55 = vpop.permute.xlu1 %2438  ;;  %v2449_v26 = vsel %vm1116_vm6, %v2447_v54, %v2441_v22 }
 0xc1b   :  { %v2448_v23 = vsel %vm1116_vm6, %v2446_v59, %v2439_v55  ;;  %v3491_v59 = vpack.c.bf16 %v2673_v42, %v2672_v25  ;;  %v2582_v55 = vrot.slane %v4249_v29, %v2581_v50 }
 0xc1c   :  { %3262 = vmatprep.mubr.msk.f32.mxu0 %vm48_vm0, %v2448_v23 }
 0xc1d   :  { %3263 = vmatmul.mubr.msk.f32.vlgmr.msra.gmra.mrb[22].mxu0 %vm48_vm0, %v2449_v26 }
 0xc1e   :  { %3482 = vmatpush3.bf16.msra.mxu0 %v3479_v49 }
 0xc1f   :  { %3484 = vmatprep.subr.bf16.mxu0 %v3483_v53 }
 0xc22   :  { %3486 = vmatpush3.bf16.msra.mxu0 %v3483_v53 }
 0xc23   :  { %3488 = vmatprep.subr.bf16.mxu0 %v3487_v43 }
 0xc26   :  { %3490 = vmatpush3.bf16.msra.mxu0 %v3487_v43 }
 0xc27   :  { %3492 = vmatprep.subr.bf16.mxu0 %v3491_v59 }
 0xc2a   :  { %3494 = vmatpush3.bf16.msra.mxu0 %v3491_v59 }
 0xcf0   :  { %v3264_v10 = vpop.f32.mrb[22].mxu0 }
 0xcf1   :  { %v2532_v40 = vadd.f32 %v3264_v10, %v2453_v6  ;;  %v2526_v16 = vpop.f32.mrb[23].mxu0 }
 0xcf2   :  { %v2527_v15 = vadd.f32 %v2526_v16, %v2453_v6  ;;  %v2677_v16 = vrot.slane %v4052_v63, %v46_v20 }
 0xcf3   :  { %v2536_v31 = vadd.f32 %v2532_v40, %v4060_v14 }
 0xcf4   :  { %v2535_v32 = vadd.f32 %v2527_v15, %v4062_v5  ;;  %v2575_v5 = vld [vmem:[%s4338_s4 + $0x20] sm:$0xff]  ;;  %s3709_s4 = smov [#allocation2]  }
 0xcf5   :  { %v2540_v12 = vsel %vm48_vm0, %v2536_v31, 0.0  ;;  %v3471_v44 = vpack.c.bf16 %v2576_v36, %v2575_v5  ;;  %s2807_s0 = sshll.u32 %s3709_s4, 4  ;;  %s2808_s0 = int_to_ptr.vmem [resolvable:$true] %s2807_s0 }
 0xcf6   :  { %2541 = vadd.xlane.f32.xlu0 %v2540_v12  ;;  %v2537_v8 = vsel %vm48_vm0, %v2535_v32, 0.0  ;;  %s3677_s15 = scalar_lea.vmem %s2808_s0, 256  ;;  %p3682_p1 = scmp.lt.s32.totalorder %s2808_s0, %s2808_s0 }
 0xcf7   :  { %2538 = vadd.xlane.f32.xlu1 %v2537_v8  ;;  %3472 = vmatprep.subr.bf16.mxu1 %v3471_v44  ;;  %p3678_p0 = scmp.ne.s32.totalorder %s2808_s0, %s3677_s15  ;;  %p3683_p2 = scmp.lt.s32.totalorder %s3677_s15, %s3677_s15 }
 0xcf8   :  { %3474 = vmatpush3.bf16.msra.mxu1 %v3471_v44 }
 0xcf9   :  { %3476 = vmatprep.subr.bf16.mxu1 %v3475_v47  ;;  %p3684_p3 = por %p3683_p2, %p3682_p1 }
 0xcfb   :  { %p3685_p4 = pnand %p3684_p3, %p3678_p0 }
 0xcfc   :  { %3478 = vmatpush3.bf16.msra.mxu1 %v3475_v47 }
 0xd83   :  { %v2542_v33 = vpop.xlane.xlu0 %2541 }
 0xd84   :  { %v2544_v34 = vmul.f32 0.03125, %v2542_v33  ;;  %v2539_v2 = vpop.xlane.xlu1 %2538 }
 0xd85   :  { %v2543_v17 = vmul.f32 0.03125, %v2539_v2 }
 0xd86   :  { %v2546_v35 = vsub.f32 %v2536_v31, %v2544_v34 }
 0xd87   :  { %v2545_v18 = vsub.f32 %v2535_v32, %v2543_v17 }
 0xd88   :  { %v2548_v38 = vmul.f32 %v2546_v35, %v2546_v35 }
 0xd89   :  { %v2547_v24 = vmul.f32 %v2545_v18, %v2545_v18 }
 0xd8a   :  { %v2552_v39 = vsel %vm48_vm0, %v2548_v38, 0.0 }
 0xd8b   :  { %2553 = vadd.xlane.f32.xlu1 %v2552_v39  ;;  %v2549_v14 = vsel %vm48_vm0, %v2547_v24, 0.0 }
 0xd8c   :  { %2550 = vadd.xlane.f32.xlu0 %v2549_v14 }
 0xe18   :  { %v2554_v57 = vpop.xlane.xlu1 %2553 }
 0xe19   :  { %v2556_v46 = vmul.f32 0.03125, %v2554_v57  ;;  %v2551_v37 = vpop.xlane.xlu0 %2550 }
 0xe1a   :  { %v2555_v58 = vmul.f32 0.03125, %v2551_v37 }
 0xe1b   :  { %v2558_v60 = vadd.f32 1e-05, %v2556_v46 }
 0xe1c   :  { %v2557_v61 = vadd.f32 1e-05, %v2555_v58 }
 0xe1d   :  { %3668 = vrsqrt.f32 %v2558_v60 }
 0xe1e   :  { %3670 = vrsqrt.f32 %v2557_v61 }
 0xe27   :  { %v3669_v0 = vpop.eup %3668 }
 0xe28   :  { %v3671_v30 = vpop.eup %3670  ;;  %v2562_v1 = vmul.f32 %v3669_v0, %v2546_v35 }
 0xe29   :  { %v2561_v7 = vmul.f32 %v3671_v30, %v2545_v18 }
 0xe2a   :  { %v2568_v21 = vmul.f32 %v2566_v62, %v2562_v1 }
 0xe2b   :  { %v2567_v13 = vmul.f32 %v2566_v62, %v2561_v7 }
 0xe2c   :  { %v2574_v22 = vadd.f32 %v2572_v11, %v2568_v21 }
 0xe2d   :  { %v2573_v9 = vadd.f32 %v2572_v11, %v2567_v13 }
 0xe2f   :  { %3273 = vmatprep.mubr.msk.f32.mxu1 %vm48_vm0, %v2573_v9 }
 0xe30   :  { %3274 = vmatmul.mubr.msk.f32.vlgmr.msra.gmra.mrb[26].mxu1 %vm48_vm0, %v2574_v22 }
 0xf03   :  { %v3275_v54 = vpop.f32.mrb[26].mxu1 }
 0xf04   :  { %v2661_v23 = vadd.f32 %v3275_v54, %v2582_v55  ;;  %v2655_v26 = vpop.f32.mrb[27].mxu1 }
 0xf05   :  { %v2656_v6 = vadd.f32 %v2655_v26, %v2582_v55 }
 0xf06   :  { %v2665_v40 = vmax.f32 %v2661_v23, 0.0 }
 0xf07   :  { %v2664_v10 = vmax.f32 %v2656_v6, 0.0 }
 0xf09   :  { %3292 = vmatprep.mubr.msk.f32.mxu0 %vm2678_vm7, %v2664_v10 }
 0xf0a   :  { %3293 = vmatmul.mubr.msk.f32.vlgmr.msra.gmra.mrb[24].mxu0 %vm2678_vm7, %v2665_v40 }
 0xfdd   :  { %v3294_v15 = vpop.f32.mrb[24].mxu0 }
 0xfde   :  { %v2757_v31 = vadd.f32 %v3294_v15, %v2677_v16  ;;  %v2751_v32 = vpop.f32.mrb[25].mxu0 }
 0xfdf   :  { %v2752_v12 = vadd.f32 %v2751_v32, %v2677_v16 }
 0xfe0   :  { %v2761_v8 = vadd.f32 %v2757_v31, %v2574_v22 }
 0xfe1   :  { %v2760_v33 = vadd.f32 %v2752_v12, %v2573_v9 }
 0xfe2   :  { %v2765_v29 = vsel %vm48_vm0, %v2761_v8, 0.0 }
 0xfe3   :  { %2766 = vadd.xlane.f32.xlu1 %v2765_v29  ;;  %v2762_v34 = vsel %vm48_vm0, %v2760_v33, 0.0 }
 0xfe4   :  { %2763 = vadd.xlane.f32.xlu0 %v2762_v34 }
0x1070   :  { %v2767_v2 = vpop.xlane.xlu1 %2766 }
0x1071   :  { %v2769_v17 = vmul.f32 0.03125, %v2767_v2  ;;  %v2764_v35 = vpop.xlane.xlu0 %2763 }
0x1072   :  { %v2768_v18 = vmul.f32 0.03125, %v2764_v35 }
0x1073   :  { %v2771_v38 = vsub.f32 %v2761_v8, %v2769_v17 }
0x1074   :  { %v2770_v24 = vsub.f32 %v2760_v33, %v2768_v18 }
0x1075   :  { %v2773_v39 = vmul.f32 %v2771_v38, %v2771_v38 }
0x1076   :  { %v2772_v20 = vmul.f32 %v2770_v24, %v2770_v24 }
0x1077   :  { %v2777_v14 = vsel %vm48_vm0, %v2773_v39, 0.0 }
0x1078   :  { %2778 = vadd.xlane.f32.xlu1 %v2777_v14  ;;  %v2774_v5 = vsel %vm48_vm0, %v2772_v20, 0.0 }
0x1079   :  { %2775 = vadd.xlane.f32.xlu0 %v2774_v5 }
0x1105   :  { %v2779_v36 = vpop.xlane.xlu1 %2778 }
0x1106   :  { %v2781_v44 = vmul.f32 0.03125, %v2779_v36  ;;  %v2776_v48 = vpop.xlane.xlu0 %2775 }
0x1107   :  { %v2780_v27 = vmul.f32 0.03125, %v2776_v48 }
0x1108   :  { %v2783_v47 = vadd.f32 1e-05, %v2781_v44 }
0x1109   :  { %v2782_v3 = vadd.f32 1e-05, %v2780_v27 }
0x110a   :  { %3672 = vrsqrt.f32 %v2783_v47 }
0x110b   :  { %3674 = vrsqrt.f32 %v2782_v3 }
0x1114   :  { %v3673_v51 = vpop.eup %3672 }
0x1115   :  { %v3675_v49 = vpop.eup %3674  ;;  %v2787_v53 = vmul.f32 %v3673_v51, %v2771_v38 }
0x1116   :  { %v2786_v56 = vmul.f32 %v3675_v49, %v2770_v24 }
0x1117   :  { %v2793_v41 = vmul.f32 %v2791_v4, %v2787_v53 }
0x1118   :  { %v2792_v43 = vmul.f32 %v2791_v4, %v2786_v56 }
0x1119   :  { %v2799_v57 = vadd.f32 %v2797_v45, %v2793_v41 }
0x111a   :  { %v2798_v46 = vadd.f32 %v2797_v45, %v2792_v43 }
0x111b   :  { %2801 = vst.msk [vmem:[#allocation2 + $0x8] sm:$0xff] %vm48_vm0, %v2799_v57 }
0x111c   :  { %2800 = vst.msk [vmem:[#allocation2] sm:$0xff] %vm48_vm0, %v2798_v46 }
0x111d   :  { %3688 = shalt.err (!%p3685_p4)
}
0x111e   :  { %s3689_s5 = scalar_lea.hbm %s4340_s6, 256 }
0x111f   :  { %p3690_p5 = scmp.ne.s32.totalorder %s4340_s6, %s3689_s5  ;;  %p3693_p6 = scmp.lt.u32.totalorder %s3689_s5, %s4340_s6 }
0x1121   :  { %p3695_p7 = pnand %p3693_p6, %p3690_p5 }
0x1123   :  { %3698 = shalt.err (!%p3695_p7)
}
0x1124   :  { %s3710_s18 = smov 128  }
0x1125   :  { %2813 = dma.vmem_to_hbm [thread:$0]  %s2808_s0, 256, %s4340_s6, [#allocation3], %s3710_s18, %s3710_s18, %s3706_s9  }
0x1126   :  { %3699 = dma.done.wait [#allocation3], 256  }
0x1127   :  { %3700 = vsyncadd [#allocation3], 4294967040 }
0x1128   :  { %2817 = vsyncpa [#allocation3], 1 }

</bundles_post_ra>
